<compile_context>
chip_gen: v7x
topology: tpu7x:2x2x1
jax: 0.10.0
libtpu: 0.0.40
codegen_flags: <defaults>
</compile_context>

<pallas_src>
import jax
import jax.numpy as jnp
from jax.experimental import pallas as pl
from jax.experimental.pallas import tpu as pltpu

LANE = 128  # vreg lane width: lane-dense store / feature-padding granularity


def _round_up(x, m):
    return ((x + m - 1) // m) * m


def _pad_axis(a, axis, new_size):
    pad = new_size - a.shape[axis]
    if pad == 0:
        return a
    widths = [(0, 0)] * a.ndim
    widths[axis] = (0, pad)
    return jnp.pad(a, widths)


def _sublane(dtype):
    # 8 for f32, 16 for bf16, 32 for int8/fp8 (packed sublanes).
    return max(8, 32 // jnp.dtype(dtype).itemsize)


# --------------------------------------------------------------------------
# One-time (import-time) hardware / feature probes.  Keeps mlp_forward free of
# try/except and host syncs, so it remains jit-compatible.
# --------------------------------------------------------------------------
def _probe_tpu_topology():
    vmem_cap = 64 << 20  # conservative default (v7x per-TC VMEM)
    num_tc = 1
    try:
        info = pltpu.get_tpu_info()
        v = getattr(info, "vmem_capacity_bytes", None)
        if v:
            vmem_cap = int(v)
        for attr in ("num_cores", "core_count", "tensorcore_count",
                     "num_tensorcores", "cores_per_chip"):
            c = getattr(info, attr, None)
            if c:
                num_tc = int(c)
                break
    except Exception:
        pass
    if num_tc == 1:
        try:
            kind = jax.devices()[0].device_kind.lower()
            if "v7" in kind:  # v7x has 2 TensorCores per chip
                num_tc = 2
        except Exception:
            pass
    return vmem_cap, num_tc


def _probe_single_buffer():
    """Check once whether pl.Buffered(1) lowers on this jax/libtpu version."""
    if not hasattr(pl, "Buffered"):
        return False
    try:
        def k(x_ref, o_ref):
            o_ref[...] = x_ref[...] + 1.0

        x = jnp.zeros((16, LANE), jnp.float32)
        out = pl.pallas_call(
            k,
            out_shape=jax.ShapeDtypeStruct((16, LANE), jnp.float32),
            grid=(2,),
            in_specs=[pl.BlockSpec((8, LANE), lambda i: (0, 0),
                                   pipeline_mode=pl.Buffered(1))],
            out_specs=pl.BlockSpec((8, LANE), lambda i: (i, 0)),
        )(x)
        jax.block_until_ready(out)
        return True
    except Exception:
        return False


_VMEM_CAPACITY, _NUM_TENSORCORES = _probe_tpu_topology()
_SINGLE_BUFFER_OK = _probe_single_buffer()


# --------------------------------------------------------------------------
# Kernel
# --------------------------------------------------------------------------
def make_mlp_kernel(num_layers):
    """Fused kernel: (Linear -> ReLU) * (num_layers-1) -> Linear."""

    def kernel(*refs):
        # refs = [x_ref, w0, b0, w1, b1, ..., o_ref]
        x_ref = refs[0]
        o_ref = refs[-1]
        params = refs[1:-1]

        h = x_ref[...]
        for i in range(num_layers):
            w = params[2 * i][...]
            b = params[2 * i + 1][...]
            # MXU: native-dtype operands, f32 accumulation.
            acc = jnp.dot(h.astype(w.dtype), w,
                          preferred_element_type=jnp.float32)
            acc = acc + b.astype(jnp.float32)
            if i < num_layers - 1:
                acc = jnp.maximum(acc, 0.0)  # F.relu on the f32 accumulator
            h = acc
        o_ref[...] = h.astype(o_ref.dtype)

    return kernel


# --------------------------------------------------------------------------
# Wrapper
# --------------------------------------------------------------------------
def mlp_forward(x, weights, biases, *, tile_rows=1024, mxu_dtype=None):
    """Applies the MLP to x of shape (..., input_dim).

    weights[i]: (in_i, out_i)  (transpose of PyTorch's (out, in));
    biases[i]:  (1, out_i) or (out_i,).
    mxu_dtype:  optional dtype (e.g. jnp.bfloat16) to down-cast the weights
                once in the wrapper for faster MXU / less DMA; accumulation
                stays f32 inside the kernel.
    """
    num_layers = len(weights)
    in_dim = x.shape[-1]
    out_dim = weights[-1].shape[1]
    lead_shape = x.shape[:-1]

    x2 = x.reshape(-1, in_dim)
    n = x2.shape[0]
    x_itemsize = jnp.dtype(x.dtype).itemsize
    sub = _sublane(x.dtype)

    # ---- lane-dense feature padding (exact: padded channels are zero) ----
    out_dims = [w.shape[1] for w in weights]
    out_pads = [_round_up(d, LANE) for d in out_dims]
    in_pads = [in_dim] + out_pads[:-1]
    w_pad, b_pad = [], []
    for i, (w, b) in enumerate(zip(weights, biases)):
        wp = _pad_axis(_pad_axis(w, 0, in_pads[i]), 1, out_pads[i])
        if mxu_dtype is not None:
            wp = wp.astype(mxu_dtype)
        w_pad.append(wp)
        b_pad.append(_pad_axis(jnp.reshape(b, (1, -1)), 1, out_pads[i]))
    out_pad = out_pads[-1]
    max_pad = max(out_pads)

    params_flat = []
    for wp, bp in zip(w_pad, b_pad):
        params_flat.extend((wp, bp))
    weight_bytes = sum(a.size * jnp.dtype(a.dtype).itemsize
                       for a in params_flat)
    wbuf = 1 if _SINGLE_BUFFER_OK else 2

    # ---- row tile: large, sublane-aligned, fits the VMEM budget ----------
    # Per-row VMEM cost: double-buffered x block + double-buffered out block
    # + f32 intermediates (a couple of layers live at once).
    bytes_per_row = (2 * in_dim * x_itemsize
                     + 2 * out_pad * x_itemsize
                     + 3 * max_pad * 4)
    vmem_budget = int(0.75 * _VMEM_CAPACITY)
    avail = vmem_budget - wbuf * weight_bytes
    if avail <= bytes_per_row * sub:
        # TODO(synk): K/N-tile the wide layers with an "arbitrary" grid axis +
        # f32 VMEM accumulator instead of keeping all weights resident.
        tile_cap = sub
    else:
        tile_cap = (avail // bytes_per_row) // sub * sub

    n_rounded = _round_up(max(n, 1), sub)
    tile = min(_round_up(tile_rows, sub), n_rounded, tile_cap)
    tile = max(tile, sub)

    # ---- grid: one big step on single-TC chips; even split on 2-TC chips --
    steps = pl.cdiv(n, tile)
    if _NUM_TENSORCORES >= 2 and n > 2 * sub:
        if steps < 2:
            steps = 2
        elif steps % 2 == 1:
            steps += 1
        tile = max(sub, _round_up(pl.cdiv(n, steps), sub))
        tile = min(tile, n_rounded)
        steps = pl.cdiv(n, tile)
    grid = (steps,)

    # ---- scheduling hints --------------------------------------------------
    flops = 2 * n * sum(w.shape[0] * w.shape[1] for w in w_pad)
    bytes_accessed = (x2.size * x_itemsize
                      + weight_bytes
                      + n * out_pad * x_itemsize)
    cost = pl.CostEstimate(flops=flops, transcendentals=0,
                           bytes_accessed=bytes_accessed)

    needed_vmem = (wbuf * weight_bytes + tile * bytes_per_row) + (4 << 20)
    vmem_limit = int(min(0.9 * _VMEM_CAPACITY, max(needed_vmem, 32 << 20)))

    # ---- BlockSpecs --------------------------------------------------------
    def _const_spec(shape):
        if _SINGLE_BUFFER_OK:
            # Constant block index across the grid -> a single pipeline buffer
            # is enough; the default second buffer would be wasted VMEM.
            return pl.BlockSpec(shape, lambda i: (0, 0),
                                pipeline_mode=pl.Buffered(1))
        return pl.BlockSpec(shape, lambda i: (0, 0))

    in_specs = [pl.BlockSpec((tile, in_dim), lambda i: (i, 0))]
    for arg in params_flat:
        in_specs.append(_const_spec(arg.shape))

    out = pl.pallas_call(
        make_mlp_kernel(num_layers),
        out_shape=jax.ShapeDtypeStruct((n, out_pad), x.dtype),
        grid=grid,
        in_specs=in_specs,
        out_specs=pl.BlockSpec((tile, out_pad), lambda i: (i, 0)),
        compiler_params=pltpu.CompilerParams(
            dimension_semantics=("parallel",),
            vmem_limit_bytes=vmem_limit),
        cost_estimate=cost,
    )(x2, *params_flat)

    # Keep the in-kernel store lane-dense (128); slice the zero pad off here.
    # (A consumer that tolerates the padded width can skip this copy.)
    if out_pad != out_dim:
        out = out[:, :out_dim]
    return out.reshape(lead_shape + (out_dim,))


# --------------------------------------------------------------------------
# Reference + synthetic init
# --------------------------------------------------------------------------
def init_mlp_params(key, input_dim, hidden_dim, output_dim, num_layers):
    """Deterministic synthetic init matching the PyTorch module's shapes."""
    h = [hidden_dim] * (num_layers - 1)
    dims_in = [input_dim] + h
    dims_out = h + [output_dim]
    weights, biases = [], []
    for n_in, n_out in zip(dims_in, dims_out):
        key, kw, kb = jax.random.split(key, 3)
        bound = 1.0 / jnp.sqrt(float(n_in))
        # Stored already transposed to (in, out) for the kernel.
        w = jax.random.uniform(kw, (n_in, n_out), jnp.float32, -bound, bound)
        b = jax.random.uniform(kb, (1, n_out), jnp.float32, -bound, bound)
        weights.append(w)
        biases.append(b)
    return weights, biases


def mlp_reference(x, weights, biases):
    """Pure-JAX reference mirroring the PyTorch forward."""
    num_layers = len(weights)
    h = x
    for i, (w, b) in enumerate(zip(weights, biases)):
        h = h @ w + jnp.reshape(b, (1, -1))[0]
        if i < num_layers - 1:
            h = jax.nn.relu(h)
    return h


if __name__ == "__main__":
    key = jax.random.PRNGKey(0)

    # Shapes consistent with MLP usage in the head: (batch, seq, input_dim).
    batch, seq = 2, 256
    input_dim, hidden_dim, output_dim, num_layers = 64, 128, 32, 3

    key, kx = jax.random.split(key)
    x = jax.random.normal(kx, (batch, seq, input_dim), jnp.float32)
    weights, biases = init_mlp_params(
        key, input_dim, hidden_dim, output_dim, num_layers)

    # --- f32 path -----------------------------------------------------------
    out = jax.block_until_ready(mlp_forward(x, weights, biases))
    ref = mlp_reference(x, weights, biases)
    assert out.shape == (batch, seq, output_dim), out.shape
    assert jnp.allclose(out, ref, atol=1e-4, rtol=1e-4), float(
        jnp.max(jnp.abs(out - ref)))

    # --- bf16 operands into the MXU (f32 accumulation inside the kernel) -----
    x_bf = x.astype(jnp.bfloat16)
    w_bf = [w.astype(jnp.bfloat16) for w in weights]
    b_bf = [b.astype(jnp.bfloat16) for b in biases]
    out_bf = jax.block_until_ready(mlp_forward(x_bf, w_bf, b_bf))
    ref_bf = mlp_reference(x_bf.astype(jnp.float32),
                           [w.astype(jnp.float32) for w in w_bf],
                           [b.astype(jnp.float32) for b in b_bf])
    assert out_bf.shape == (batch, seq, output_dim), out_bf.shape
    assert jnp.allclose(out_bf.astype(jnp.float32), ref_bf,
                        atol=3e-2, rtol=3e-2), float(
        jnp.max(jnp.abs(out_bf.astype(jnp.float32) - ref_bf)))

    # --- f32 activations with bf16 MXU weights (v6e/v7x fast path) ----------
    out_mx = jax.block_until_ready(
        mlp_forward(x, weights, biases, mxu_dtype=jnp.bfloat16))
    assert out_mx.shape == (batch, seq, output_dim), out_mx.shape
    assert jnp.allclose(out_mx, ref, atol=3e-2, rtol=3e-2), float(
        jnp.max(jnp.abs(out_mx - ref)))

    print("KERNEL_OK")
</pallas_src>

<mosaic_0001>
module attributes {stable_mosaic.version = 11 : i64} {
  func.func @k(%arg0: i32, %arg1: memref<8x128xf32, #tpu.memory_space<vmem>>, %arg2: memref<8x128xf32, #tpu.memory_space<vmem>>) attributes {dimension_semantics = [#tpu.dimension_semantics<arbitrary>], iteration_bounds = array<i64: 2>, scalar_prefetch = 0 : i64, scratch_operands = 0 : i64, tpu.core_type = #tpu.core_type<tc>, window_params = [{pipeline_mode = #tpu.pipeline_mode<synchronous>, transform_indices = @transform_0, window_bounds = array<i64: 8, 128>}, {transform_indices = @transform_1, window_bounds = array<i64: 8, 128>}]} {
    %c0 = arith.constant 0 : index
    %c0_0 = arith.constant 0 : index
    %0 = vector.load %arg1[%c0, %c0_0] : memref<8x128xf32, #tpu.memory_space<vmem>>, vector<8x128xf32>
    %cst = arith.constant 1.000000e+00 : f32
    %1 = vector.broadcast %cst : f32 to vector<8x128xf32>
    %2 = arith.addf %0, %1 : vector<8x128xf32>
    %c0_1 = arith.constant 0 : index
    %c0_2 = arith.constant 0 : index
    %3 = vector.load %arg2[%c0_1, %c0_2] : memref<8x128xf32, #tpu.memory_space<vmem>>, vector<8x128xf32>
    tpu.vector_store %arg2[%c0_1, %c0_2], %2 {strides = array<i32>} : memref<8x128xf32, #tpu.memory_space<vmem>>, vector<8x128xf32>,
    return
  }
  func.func @transform_0(%arg0: i32) -> (i32, i32) {
    %c0_i32 = arith.constant 0 : i32
    %c0_i32_0 = arith.constant 0 : i32
    %c0_i32_1 = arith.constant 0 : i32
    return %c0_i32, %c0_i32_0 : i32, i32
  }
  func.func @transform_1(%arg0: i32) -> (i32, i32) {
    %c0_i32 = arith.constant 0 : i32
    %c0_i32_0 = arith.constant 0 : i32
    return %arg0, %c0_i32 : i32, i32
  }
}

module attributes {stable_mosaic.version = 11 : i64} {
  func.func @kernel(%arg0: i32, %arg1: memref<512x64xf32, #tpu.memory_space<vmem>>, %arg2: memref<64x128xf32, #tpu.memory_space<vmem>>, %arg3: memref<1x128xf32, #tpu.memory_space<vmem>>, %arg4: memref<128x128xf32, #tpu.memory_space<vmem>>, %arg5: memref<1x128xf32, #tpu.memory_space<vmem>>, %arg6: memref<128x128xf32, #tpu.memory_space<vmem>>, %arg7: memref<1x128xf32, #tpu.memory_space<vmem>>, %arg8: memref<512x128xf32, #tpu.memory_space<vmem>>) attributes {dimension_semantics = [#tpu.dimension_semantics<parallel>], iteration_bounds = array<i64: 1>, scalar_prefetch = 0 : i64, scratch_operands = 0 : i64, tpu.core_type = #tpu.core_type<tc>, window_params = [{transform_indices = @transform_0, window_bounds = array<i64: 512, 64>}, {pipeline_mode = #tpu.pipeline_mode<synchronous>, transform_indices = @transform_1, window_bounds = array<i64: 64, 128>}, {pipeline_mode = #tpu.pipeline_mode<synchronous>, transform_indices = @transform_2, window_bounds = array<i64: 1, 128>}, {pipeline_mode = #tpu.pipeline_mode<synchronous>, transform_indices = @transform_3, window_bounds = array<i64: 128, 128>}, {pipeline_mode = #tpu.pipeline_mode<synchronous>, transform_indices = @transform_4, window_bounds = array<i64: 1, 128>}, {pipeline_mode = #tpu.pipeline_mode<synchronous>, transform_indices = @transform_5, window_bounds = array<i64: 128, 128>}, {pipeline_mode = #tpu.pipeline_mode<synchronous>, transform_indices = @transform_6, window_bounds = array<i64: 1, 128>}, {transform_indices = @transform_7, window_bounds = array<i64: 512, 128>}]} {
    %c0 = arith.constant 0 : index
    %c0_0 = arith.constant 0 : index
    %0 = vector.load %arg1[%c0, %c0_0] : memref<512x64xf32, #tpu.memory_space<vmem>>, vector<512x64xf32>
    %c0_1 = arith.constant 0 : index
    %c0_2 = arith.constant 0 : index
    %1 = vector.load %arg2[%c0_1, %c0_2] : memref<64x128xf32, #tpu.memory_space<vmem>>, vector<64x128xf32>
    %c0_3 = arith.constant 0 : index
    %c0_4 = arith.constant 0 : index
    %2 = vector.load %arg3[%c0_3, %c0_4] : memref<1x128xf32, #tpu.memory_space<vmem>>, vector<1x128xf32>
    %cst = arith.constant dense<0.000000e+00> : vector<512x128xf32>
    %3 = tpu.matmul %0, %1, %cst {dimension_numbers = #tpu.dot_dimension_numbers<[1], [0], [0], [1], [0, 0, 1, 1], [], []>} : vector<512x64xf32>, vector<64x128xf32>, vector<512x128xf32> -> vector<512x128xf32>
    %4 = vector.broadcast %2 : vector<1x128xf32> to vector<512x128xf32>
    %5 = arith.addf %3, %4 : vector<512x128xf32>
    %cst_5 = arith.constant 0.000000e+00 : f32
    %6 = vector.broadcast %cst_5 : f32 to vector<512x128xf32>
    %7 = arith.maximumf %5, %6 : vector<512x128xf32>
    %c0_6 = arith.constant 0 : index
    %c0_7 = arith.constant 0 : index
    %8 = vector.load %arg4[%c0_6, %c0_7] : memref<128x128xf32, #tpu.memory_space<vmem>>, vector<128x128xf32>
    %c0_8 = arith.constant 0 : index
    %c0_9 = arith.constant 0 : index
    %9 = vector.load %arg5[%c0_8, %c0_9] : memref<1x128xf32, #tpu.memory_space<vmem>>, vector<1x128xf32>
    %cst_10 = arith.constant dense<0.000000e+00> : vector<512x128xf32>
    %10 = tpu.matmul %7, %8, %cst_10 {dimension_numbers = #tpu.dot_dimension_numbers<[1], [0], [0], [1], [0, 0, 1, 1], [], []>} : vector<512x128xf32>, vector<128x128xf32>, vector<512x128xf32> -> vector<512x128xf32>
    %11 = vector.broadcast %9 : vector<1x128xf32> to vector<512x128xf32>
    %12 = arith.addf %10, %11 : vector<512x128xf32>
    %cst_11 = arith.constant 0.000000e+00 : f32
    %13 = vector.broadcast %cst_11 : f32 to vector<512x128xf32>
    %14 = arith.maximumf %12, %13 : vector<512x128xf32>
    %c0_12 = arith.constant 0 : index
    %c0_13 = arith.constant 0 : index
    %15 = vector.load %arg6[%c0_12, %c0_13] : memref<128x128xf32, #tpu.memory_space<vmem>>, vector<128x128xf32>
    %c0_14 = arith.constant 0 : index
    %c0_15 = arith.constant 0 : index
    %16 = vector.load %arg7[%c0_14, %c0_15] : memref<1x128xf32, #tpu.memory_space<vmem>>, vector<1x128xf32>
    %cst_16 = arith.constant dense<0.000000e+00> : vector<512x128xf32>
    %17 = tpu.matmul %14, %15, %cst_16 {dimension_numbers = #tpu.dot_dimension_numbers<[1], [0], [0], [1], [0, 0, 1, 1], [], []>} : vector<512x128xf32>, vector<128x128xf32>, vector<512x128xf32> -> vector<512x128xf32>
    %18 = vector.broadcast %16 : vector<1x128xf32> to vector<512x128xf32>
    %19 = arith.addf %17, %18 : vector<512x128xf32>
    %c0_17 = arith.constant 0 : index
    %c0_18 = arith.constant 0 : index
    %20 = vector.load %arg8[%c0_17, %c0_18] : memref<512x128xf32, #tpu.memory_space<vmem>>, vector<512x128xf32>
    tpu.vector_store %arg8[%c0_17, %c0_18], %19 {strides = array<i32>} : memref<512x128xf32, #tpu.memory_space<vmem>>, vector<512x128xf32>,
    return
  }
  func.func @transform_0(%arg0: i32) -> (i32, i32) {
    %c0_i32 = arith.constant 0 : i32
    %c0_i32_0 = arith.constant 0 : i32
    return %arg0, %c0_i32 : i32, i32
  }
  func.func @transform_1(%arg0: i32) -> (i32, i32) {
    %c0_i32 = arith.constant 0 : i32
    %c0_i32_0 = arith.constant 0 : i32
    %c0_i32_1 = arith.constant 0 : i32
    return %c0_i32, %c0_i32_0 : i32, i32
  }
  func.func @transform_2(%arg0: i32) -> (i32, i32) {
    %c0_i32 = arith.constant 0 : i32
    %c0_i32_0 = arith.constant 0 : i32
    %c0_i32_1 = arith.constant 0 : i32
    return %c0_i32, %c0_i32_0 : i32, i32
  }
  func.func @transform_3(%arg0: i32) -> (i32, i32) {
    %c0_i32 = arith.constant 0 : i32
    %c0_i32_0 = arith.constant 0 : i32
    %c0_i32_1 = arith.constant 0 : i32
    return %c0_i32, %c0_i32_0 : i32, i32
  }
  func.func @transform_4(%arg0: i32) -> (i32, i32) {
    %c0_i32 = arith.constant 0 : i32
    %c0_i32_0 = arith.constant 0 : i32
    %c0_i32_1 = arith.constant 0 : i32
    return %c0_i32, %c0_i32_0 : i32, i32
  }
  func.func @transform_5(%arg0: i32) -> (i32, i32) {
    %c0_i32 = arith.constant 0 : i32
    %c0_i32_0 = arith.constant 0 : i32
    %c0_i32_1 = arith.constant 0 : i32
    return %c0_i32, %c0_i32_0 : i32, i32
  }
  func.func @transform_6(%arg0: i32) -> (i32, i32) {
    %c0_i32 = arith.constant 0 : i32
    %c0_i32_0 = arith.constant 0 : i32
    %c0_i32_1 = arith.constant 0 : i32
    return %c0_i32, %c0_i32_0 : i32, i32
  }
  func.func @transform_7(%arg0: i32) -> (i32, i32) {
    %c0_i32 = arith.constant 0 : i32
    %c0_i32_0 = arith.constant 0 : i32
    return %arg0, %c0_i32 : i32, i32
  }
}

</mosaic_0001>

<bundles_post_ra>
// kernel: tpu_custom_call.1
= control target key start
LH: loop header
LB: loop body
LE: loop exit
PB: predicated region body
PF: predicated region fallthrough
CT: control target
= control target key end

     0   :  { %6 = vsyncpa [#allocation3], 0  ;;  %s485_s0 = inlined_call_operand.hbm [shape: f32[16,128], index: 0, kind: input, shape index: {}]   ;;  %s486_s1 = inlined_call_operand.hbm [shape: f32[16,128], index: 1, kind: output, shape index: {}]  }
   0x1   :  { %7 = vsyncpa [#allocation4], 0 }
   0x2   :  { %9 = vsyncpa [#allocation4 + $0x1], 0  ;;  %s352_s6 = smov 0   ;;  %s354_s7 = smov 0  }
   0x3   :  { %s356_s8 = smov 0   ;;  %s358_s9 = smov 0  }
   0x4 LB: > { %s373_s10 = sadd.s32 4294967295, %s338_s9   ;;  %s184_s11 = sadd.s32 4294967294, %s338_s9   ;;  %s338_s9 = sphi %s358_s9, %s502_s9   ;;  %s334_s8 = sphi %s356_s8, %s501_s8   ;;  %s330_s7 = sphi %s354_s7, %s500_s7   ;;  %s326_s6 = sphi %s352_s6, %s499_s6  }
   0x5   : > { %s377_s12 = sadd.s32 1, %s338_s9   ;;  %s43_s13 = sadd.s32 1, %s334_s8 }
   0x6   : > { %s40_s14 = ssub.s32 %s338_s9, %s377_s12  ;;  %p53_p0 = scmp.ne.s32.totalorder %s334_s8, %s330_s7 }
   0x7   : > { %p41_p1 = scmp.eq.s32.totalorder %s40_s14, 0  ;;  %p54_p2 = scmp.eq.s32.totalorder %s373_s10, 1 }
   0x8   : > { %p59_p3 = scmp.ne.s32.totalorder %s330_s7, %s326_s6  ;;  %p60_p4 = scmp.eq.s32.totalorder %s184_s11, 1 }
   0x9   : > { %s388_s15 = scalar_select %p41_p1, %s334_s8, %s43_s13  }
   0xa   : > { %p390_p5 = por %p54_p2, %p53_p0  ;;  %p394_p6 = por %p60_p4, %p59_p3 }
   0xb   : > { %p185_p7 = scmp.ge.s32.totalorder %s338_s9, 1  ;;  %p67_p8 = scmp.lt.s32.totalorder %s338_s9, 3 }
   0xc   : > { %s490_s16 = scalar_select %p390_p5, 1, 0 }
   0xd   : > { %s491_s17 = scalar_select %p394_p6, 1, 0 }
   0xe   : > { %p487_p9 = scmp.eq.s32.totalorder %s373_s10, 0  ;;  %p401_p10 = pnand %p185_p7, %p67_p8 }
   0xf   : > { %s340_s19 = smov [#allocation2]   ;;  %s244_s24 = scalar_lea.hbm %s485_s0, 128 }
  0x10   : > { %s492_s18 = scalar_select %p401_p10, 1, 0 }
  0x11   : > { %s80_s20 = sshll.u32 %s340_s19, 4  ;;  %p200_p11 = pneg %p401_p10  ;;  %s81_s20 = int_to_ptr.vmem [resolvable:$true] %s80_s20 }
  0x12   : > { %p245_p13 = scmp.ne.s32.totalorder %s485_s0, %s244_s24  ;;  %s249_s29 = scalar_lea.hbm %s485_s0, 256 }
  0x13   : > { %p409_p12 = pnand %p487_p9, %p200_p11  ;;  %p250_p3 = scmp.lt.u32.totalorder %s249_s29, %s244_s24 }
  0x14   : > { %p251_p4 = scmp.lt.u32.totalorder %s244_s24, %s485_s0 }
  0x15   : > { %p246_p0 = pneg %p409_p12 }
  0x16   : > { %p252_p7 = por %p251_p4, %p250_p3 }
  0x17   : > { %p247_p1 = pnand %p246_p0, %p245_p13 }
  0x19   : > { %p248_p2 = pneg %p247_p1 }
  0x1b   : > { %p253_p8 = pnand %p252_p7, %p248_p2 }
  0x1d   : > { %256 = shalt.err (!%p253_p8)
}
  0x1e   : > { %s257_s3 = scalar_lea.vmem %s81_s20, 128  ;;  %p265_p5 = scmp.lt.s32.totalorder %s81_s20, %s81_s20 }
  0x1f   : > { %p258_p11 = scmp.ne.s32.totalorder %s81_s20, %s257_s3  ;;  %p266_p10 = scmp.lt.s32.totalorder %s257_s3, %s257_s3 }
  0x21   : > { %p260_p9 = pnand %p258_p11, %p246_p0  ;;  %p267_p13 = por %p266_p10, %p265_p5 }
  0x23   : > { %p261_p6 = pneg %p260_p9 }
  0x25   : > { %p268_p1 = pnand %p267_p13, %p261_p6 }
  0x27   : > { %271 = shalt.err (!%p268_p1)
}
  0x28   : > { %203 = dma.hbm_to_vmem [thread:$0]  (!%p409_p12), %s485_s0, 128, %s81_s20, [#allocation3]  }
  0x29   : > { %p494_p3 = scmp.ne.s32.totalorder %s492_s18, 0 }
  0x2a   : > { %p495_p2 = scmp.eq.s32.totalorder (!%p494_p3), %s373_s10, 0 }
  0x2b   : > { %93 = sbr.rel (%p494_p3) target bundleno = 77 (0x4d), region = 24 }
  0x32   : > { %317 = dma.done.wait (%p495_p2), [#allocation3], 128   ;;  %p496_p0 = pmov %p495_p2 }
  0x33   : > { %s105_s11 = sand.u32 1, %s330_s7   ;;  %s191_s21 = sshll.u32 %s373_s10, 7  ;;  %v108_v0 = vld [vmem:[#allocation2] sm:$0xff] }
  0x34   : > { %319 = vsyncadd (%p496_p0), [#allocation3], 4294967168  ;;  %s189_s13 = sshll.u32 %s105_s11, 3  ;;  %v109_v1 = vadd.f32 1.0, %v108_v0  ;;  %s445_s22 = scalar_lea.hbm %s486_s1, %s191_s21 }
  0x35   : > { %s107_s14 = scalar_lea.vmem [#allocation5], %s189_s13  ;;  %s112_s23 = scalar_lea.sflag [#allocation4], %s105_s11 }
  0x36   : > { %s125_s19 = sshll.u32 %s107_s14, 4  ;;  %110 = vst [vmem:[%s107_s14] sm:$0xff] %v109_v1  ;;  %p497_p6 = scmp.ne.s32.totalorder %s490_s16, 0  ;;  %s440_s19 = int_to_ptr.vmem [resolvable:$true] %s125_s19 }
  0x37   : > { %s272_s24 = scalar_lea.vmem %s440_s19, 128  ;;  %s341_s10 = smov [#allocation5]  }
  0x38   : > { %p273_p5 = scmp.ne.s32.totalorder %s440_s19, %s272_s24  ;;  %s276_s25 = sshll.u32 %s341_s10, 4  ;;  %s277_s25 = int_to_ptr.vmem [resolvable:$false] %s276_s25 }
  0x39   : > { %s278_s26 = scalar_lea.vmem %s277_s25, 256  ;;  %p279_p12 = scmp.lt.s32.totalorder %s440_s19, %s277_s25 }
  0x3a   : > { %p274_p9 = pnand %p273_p5, %p497_p6  ;;  %p280_p4 = scmp.lt.s32.totalorder %s278_s26, %s272_s24 }
  0x3c   : > { %p275_p10 = pneg %p274_p9  ;;  %p281_p7 = por %p280_p4, %p279_p12 }
  0x3e   : > { %p282_p8 = pnand %p281_p7, %p275_p10 }
  0x40   : > { %285 = shalt.err (!%p282_p8)
}
  0x41   : > { %s286_s27 = scalar_lea.hbm %s445_s22, 128  ;;  %s290_s30 = scalar_lea.hbm %s486_s1, 256 }
  0x42   : > { %p287_p11 = scmp.ne.s32.totalorder %s445_s22, %s286_s27  ;;  %p291_p3 = scmp.lt.u32.totalorder %s445_s22, %s486_s1 }
  0x43   : > { %p292_p2 = scmp.lt.u32.totalorder %s290_s30, %s286_s27  ;;  %p294_p5 = scmp.lt.u32.totalorder %s286_s27, %s445_s22 }
  0x44   : > { %p288_p13 = pnand %p287_p11, %p497_p6 }
  0x45   : > { %p293_p0 = por %p292_p2, %p291_p3 }
  0x46   : > { %p289_p1 = pneg %p288_p13 }
  0x47   : > { %p295_p9 = por %p294_p5, %p293_p0 }
  0x49   : > { %p296_p10 = pnand %p295_p9, %p289_p1 }
  0x4b   : > { %299 = shalt.err (!%p296_p10)
}
  0x4c   : > { %198 = dma.vmem_to_hbm [thread:$0]  (%p497_p6), %s440_s19, 128, %s445_s22, %s112_s23  }
  0x4d PF: > { %p210_p12 = scmp.ge.s32.totalorder %s338_s9, 2  ;;  %s137_s4 = sand.u32 1, %s326_s6  }
  0x4e   : > { %p498_p4 = scmp.ne.s32.totalorder %s491_s17, 0  ;;  %s138_s5 = scalar_lea.sflag [#allocation4], %s137_s4 }
  0x50   : > { %p205_p7 = pnand %p210_p12, %p498_p4 }
  0x52   : > { %321 = dma.done.wait (!%p205_p7), %s138_s5, 128  }
  0x53   : > { %323 = vsyncadd (!%p205_p7), %s138_s5, 4294967168  ;;  %p12_p8 = scmp.ge.s32.totalorder %s377_s12, 4   ;;  %s499_s6 = smov %s330_s7 }
  0x54   : > { %s500_s7 = smov %s334_s8  ;;  %s501_s8 = smov %s388_s15 }
  0x55   : > { %s502_s9 = smov %s377_s12  ;;  %14 = sbr.rel (!%p12_p8) target bundleno = 4 (0x4), region = 61 }
  0x5c   :  { %143 = vsyncpa [#allocation3], 1 }
  0x5d   :  { %145 = vsyncpa [#allocation3 + $0x1], 1 }
  0x5e   :  { %146 = vsyncpa [#allocation4], 1 }
  0x5f   :  { %148 = vsyncpa [#allocation4 + $0x1], 1 }

// kernel: tpu_custom_call.1
= control target key start
LH: loop header
LB: loop body
LE: loop exit
PB: predicated region body
PF: predicated region fallthrough
CT: control target
= control target key end

     0   :  { %vm106_vm0 = vcmask 523264   ;;  %s3224_s0 = inlined_call_operand.vmem [shape: f32[512,64], index: 0, kind: input, shape index: {}]   ;;  %s3225_s1 = inlined_call_operand.vmem [shape: f32[64,128], index: 1, kind: input, shape index: {}]   ;;  %s3226_s2 = inlined_call_operand.vmem [shape: f32[1,128], index: 2, kind: input, shape index: {}]   ;;  %s3227_s3 = inlined_call_operand.vmem [shape: f32[128,128], index: 3, kind: input, shape index: {}]   ;;  %s3228_s4 = inlined_call_operand.vmem [shape: f32[1,128], index: 4, kind: input, shape index: {}]   ;;  %s3229_s5 = inlined_call_operand.vmem [shape: f32[128,128], index: 5, kind: input, shape index: {}]   ;;  %s3230_s6 = inlined_call_operand.vmem [shape: f32[1,128], index: 6, kind: input, shape index: {}]   ;;  %s3231_s7 = inlined_call_operand.hbm [shape: f32[512,128], index: 7, kind: output, shape index: {}]  }
   0x1   :  { %v91_v0 = vld [vmem:[%s3225_s1] sm:$0xff]  ;;  %v92_v1 = vld [vmem:[%s3225_s1 + $0x8] sm:$0xff]  ;;  %v93_v2 = vld [vmem:[%s3225_s1 + $0x10] sm:$0xff] }
   0x2   :  { %v2375_v3 = vpack.c.bf16 %v92_v1, %v91_v0  ;;  %v94_v4 = vld [vmem:[%s3225_s1 + $0x18] sm:$0xff]  ;;  %v95_v6 = vld [vmem:[%s3225_s1 + $0x20] sm:$0xff]  ;;  %v96_v7 = vld [vmem:[%s3225_s1 + $0x28] sm:$0xff] }
   0x3   :  { %v2379_v5 = vpack.c.bf16 %v94_v4, %v93_v2  ;;  %v27_v8 = vld [vmem:[%s3224_s0] sm:$0xff]  ;;  %v2383_v9 = vpack.c.bf16 %v96_v7, %v95_v6  ;;  %v97_v10 = vld [vmem:[%s3225_s1 + $0x30] sm:$0xff]  ;;  %v98_v11 = vld [vmem:[%s3225_s1 + $0x38] sm:$0xff] }
   0x4   :  { %2376 = vmatprep.subr.bf16.mxu0 %v2375_v3  ;;  %2023 = vmatprep.mubr.msk.f32.mxu0 %vm106_vm0, %v27_v8  ;;  %v2387_v12 = vpack.c.bf16 %v98_v11, %v97_v10  ;;  %v59_v13 = vld [vmem:[%s3224_s0 + $0x100] sm:$0xff]  ;;  %v28_v14 = vld [vmem:[%s3224_s0 + $0x8] sm:$0xff]  ;;  %v29_v15 = vld [vmem:[%s3224_s0 + $0x10] sm:$0xff] }
   0x5   :  { %2378 = vmatpush3.bf16.msra.mxu0 %v2375_v3  ;;  %2455 = vmatprep.subr.bf16.mxu1 %v2375_v3  ;;  %v60_v16 = vld [vmem:[%s3224_s0 + $0x108] sm:$0xff]  ;;  %v61_v17 = vld [vmem:[%s3224_s0 + $0x110] sm:$0xff]  ;;  %v30_v18 = vld [vmem:[%s3224_s0 + $0x18] sm:$0xff] }
   0x6   :  { %2380 = vmatprep.subr.bf16.mxu0 %v2379_v5  ;;  %2459 = vmatpush3.bf16.msra.mxu1 %v2375_v3  ;;  %v31_v19 = vld [vmem:[%s3224_s0 + $0x20] sm:$0xff]  ;;  %v62_v20 = vld [vmem:[%s3224_s0 + $0x118] sm:$0xff]  ;;  %v32_v22 = vld [vmem:[%s3224_s0 + $0x28] sm:$0xff] }
   0x7   :  { %2456 = vmatprep.subr.bf16.mxu1 %v2379_v5  ;;  %2071 = vmatprep.mubr.msk.f32.mxu1 %vm106_vm0, %v59_v13  ;;  %v63_v21 = vld [vmem:[%s3224_s0 + $0x120] sm:$0xff]  ;;  %v749_v24 = vld [vmem:[%s3227_s3 + $0x8] sm:$0xff]  ;;  %v750_v25 = vld [vmem:[%s3227_s3 + $0x10] sm:$0xff] }
   0x8   :  { %v748_v23 = vld [vmem:[%s3227_s3] sm:$0xff]  ;;  %v33_v26 = vld [vmem:[%s3224_s0 + $0x30] sm:$0xff]  ;;  %v64_v27 = vld [vmem:[%s3224_s0 + $0x128] sm:$0xff] }
   0x9   :  { %2382 = vmatpush3.bf16.msra.mxu0 %v2379_v5  ;;  %v2391_v28 = vpack.c.bf16 %v749_v24, %v748_v23  ;;  %v751_v29 = vld [vmem:[%s3227_s3 + $0x18] sm:$0xff]  ;;  %v65_v30 = vld [vmem:[%s3224_s0 + $0x130] sm:$0xff]  ;;  %v752_v32 = vld [vmem:[%s3227_s3 + $0x20] sm:$0xff] }
   0xa   :  { %2384 = vmatprep.subr.bf16.mxu0 %v2383_v9  ;;  %2460 = vmatpush3.bf16.msra.mxu1 %v2379_v5  ;;  %v2395_v31 = vpack.c.bf16 %v751_v29, %v750_v25  ;;  %v753_v33 = vld [vmem:[%s3227_s3 + $0x28] sm:$0xff]  ;;  %v34_v34 = vld [vmem:[%s3224_s0 + $0x38] sm:$0xff]  ;;  %v35_v35 = vld [vmem:[%s3224_s0 + $0x40] sm:$0xff] }
   0xb   :  { %2457 = vmatprep.subr.bf16.mxu1 %v2383_v9  ;;  %v66_v36 = vld [vmem:[%s3224_s0 + $0x138] sm:$0xff] }
   0xd   :  { %2386 = vmatpush3.bf16.msra.mxu0 %v2383_v9 }
   0xe   :  { %2388 = vmatprep.subr.bf16.mxu0 %v2387_v12  ;;  %2461 = vmatpush3.bf16.msra.mxu1 %v2383_v9 }
   0xf   :  { %2458 = vmatprep.subr.bf16.mxu1 %v2387_v12 }
  0x11   :  { %2390 = vmatpush3.bf16.msra.mxu0 %v2387_v12 }
  0x12   :  { %2462 = vmatpush3.bf16.msra.mxu1 %v2387_v12 }
  0x13   :  { %2392 = vmatprep.subr.bf16.mxu1 %v2391_v28 }
  0x14   :  { %2024 = vmatmul.mubr.msk.f32.vlgmr.msra.gmra.mrb[0].mxu0 %vm106_vm0, %v28_v14 }
  0x15   :  { %2026 = vmatprep.mubr.msk.f32.mxu0 %vm106_vm0, %v29_v15  ;;  %2072 = vmatmul.mubr.msk.f32.vlgmr.msra.gmra.mrb[0].mxu1 %vm106_vm0, %v60_v16 }
  0x16   :  { %2074 = vmatprep.mubr.msk.f32.mxu1 %vm106_vm0, %v61_v17  ;;  %2394 = vmatpush3.bf16.msra.mxu1 %v2391_v28 }
  0x18   :  { %2027 = vmatmul.mubr.msk.f32.gmra.mrb[2].mxu0 %vm106_vm0, %v30_v18 }
  0x19   :  { %2029 = vmatprep.mubr.msk.f32.mxu0 %vm106_vm0, %v31_v19  ;;  %2075 = vmatmul.mubr.msk.f32.gmra.mrb[2].mxu1 %vm106_vm0, %v62_v20 }
  0x1a   :  { %2077 = vmatprep.mubr.msk.f32.mxu1 %vm106_vm0, %v63_v21 }
  0x1c   :  { %2030 = vmatmul.mubr.msk.f32.gmra.mrb[4].mxu0 %vm106_vm0, %v32_v22 }
  0x1d   :  { %2032 = vmatprep.mubr.msk.f32.mxu0 %vm106_vm0, %v33_v26  ;;  %2078 = vmatmul.mubr.msk.f32.gmra.mrb[4].mxu1 %vm106_vm0, %v64_v27 }
  0x1e   :  { %2080 = vmatprep.mubr.msk.f32.mxu1 %vm106_vm0, %v65_v30 }
  0x1f   :  { %12 = vsyncpa [#allocation3], 0  ;;  %v67_v37 = vld [vmem:[%s3224_s0 + $0x140] sm:$0xff]  ;;  %2396 = vmatprep.subr.bf16.mxu1 %v2395_v31  ;;  %v2399_v38 = vpack.c.bf16 %v753_v33, %v752_v32  ;;  %v754_v39 = vld [vmem:[%s3227_s3 + $0x30] sm:$0xff] }
  0x20   :  { %2033 = vmatmul.mubr.msk.f32.gmra.mrb[6].mxu0 %vm106_vm0, %v34_v34  ;;  %v755_v40 = vld [vmem:[%s3227_s3 + $0x38] sm:$0xff]  ;;  %v36_v41 = vld [vmem:[%s3224_s0 + $0x48] sm:$0xff]  ;;  %v37_v42 = vld [vmem:[%s3224_s0 + $0x50] sm:$0xff]  ;;  %2398 = vmatpush3.bf16.msra.mxu1 %v2395_v31 }
  0x21   :  { %2035 = vmatprep.mubr.msk.f32.mxu0 %vm106_vm0, %v35_v35  ;;  %2081 = vmatmul.mubr.msk.f32.gmra.mrb[6].mxu1 %vm106_vm0, %v66_v36  ;;  %v68_v43 = vld [vmem:[%s3224_s0 + $0x148] sm:$0xff]  ;;  %v69_v44 = vld [vmem:[%s3224_s0 + $0x150] sm:$0xff]  ;;  %v2403_v45 = vpack.c.bf16 %v755_v40, %v754_v39  ;;  %v756_v46 = vld [vmem:[%s3227_s3 + $0x40] sm:$0xff] }
  0x22   :  { %2083 = vmatprep.mubr.msk.f32.mxu1 %vm106_vm0, %v67_v37  ;;  %2400 = vmatprep.subr.bf16.mxu1 %v2399_v38  ;;  %v757_v47 = vld [vmem:[%s3227_s3 + $0x48] sm:$0xff]  ;;  %v38_v48 = vld [vmem:[%s3224_s0 + $0x58] sm:$0xff]  ;;  %v39_v49 = vld [vmem:[%s3224_s0 + $0x60] sm:$0xff] }
  0x23   :  { %v70_v50 = vld [vmem:[%s3224_s0 + $0x158] sm:$0xff]  ;;  %v71_v51 = vld [vmem:[%s3224_s0 + $0x160] sm:$0xff]  ;;  %v2407_v52 = vpack.c.bf16 %v757_v47, %v756_v46  ;;  %v758_v53 = vld [vmem:[%s3227_s3 + $0x50] sm:$0xff] }
  0x24   :  { %2036 = vmatmul.mubr.msk.f32.gmra.mrb[8].mxu0 %vm106_vm0, %v36_v41  ;;  %2402 = vmatpush3.bf16.msra.mxu1 %v2399_v38  ;;  %v759_v54 = vld [vmem:[%s3227_s3 + $0x58] sm:$0xff]  ;;  %v40_v55 = vld [vmem:[%s3224_s0 + $0x68] sm:$0xff]  ;;  %v41_v56 = vld [vmem:[%s3224_s0 + $0x70] sm:$0xff] }
  0x25   :  { %2038 = vmatprep.mubr.msk.f32.mxu0 %vm106_vm0, %v37_v42  ;;  %2084 = vmatmul.mubr.msk.f32.gmra.mrb[8].mxu1 %vm106_vm0, %v68_v43  ;;  %v72_v57 = vld [vmem:[%s3224_s0 + $0x168] sm:$0xff]  ;;  %v73_v58 = vld [vmem:[%s3224_s0 + $0x170] sm:$0xff]  ;;  %v2411_v59 = vpack.c.bf16 %v759_v54, %v758_v53  ;;  %v760_v60 = vld [vmem:[%s3227_s3 + $0x60] sm:$0xff] }
  0x26   :  { %2086 = vmatprep.mubr.msk.f32.mxu1 %vm106_vm0, %v69_v44  ;;  %2404 = vmatprep.subr.bf16.mxu1 %v2403_v45  ;;  %v761_v61 = vld [vmem:[%s3227_s3 + $0x68] sm:$0xff]  ;;  %v42_v62 = vld [vmem:[%s3224_s0 + $0x78] sm:$0xff]  ;;  %v43_v63 = vld [vmem:[%s3224_s0 + $0x80] sm:$0xff] }
  0x27   :  { %v74_v0 = vld [vmem:[%s3224_s0 + $0x178] sm:$0xff]  ;;  %v75_v1 = vld [vmem:[%s3224_s0 + $0x180] sm:$0xff]  ;;  %v2415_v2 = vpack.c.bf16 %v761_v61, %v760_v60  ;;  %v762_v3 = vld [vmem:[%s3227_s3 + $0x70] sm:$0xff] }
  0x28   :  { %2039 = vmatmul.mubr.msk.f32.gmra.mrb[10].mxu0 %vm106_vm0, %v38_v48  ;;  %2406 = vmatpush3.bf16.msra.mxu1 %v2403_v45  ;;  %v763_v4 = vld [vmem:[%s3227_s3 + $0x78] sm:$0xff]  ;;  %v44_v5 = vld [vmem:[%s3224_s0 + $0x88] sm:$0xff]  ;;  %v45_v6 = vld [vmem:[%s3224_s0 + $0x90] sm:$0xff] }
  0x29   :  { %2041 = vmatprep.mubr.msk.f32.mxu0 %vm106_vm0, %v39_v49  ;;  %2087 = vmatmul.mubr.msk.f32.gmra.mrb[10].mxu1 %vm106_vm0, %v70_v50  ;;  %v76_v7 = vld [vmem:[%s3224_s0 + $0x188] sm:$0xff]  ;;  %v77_v8 = vld [vmem:[%s3224_s0 + $0x190] sm:$0xff]  ;;  %v2419_v9 = vpack.c.bf16 %v763_v4, %v762_v3  ;;  %v46_v10 = vld [vmem:[%s3224_s0 + $0x98] sm:$0xff] }
  0x2a   :  { %2089 = vmatprep.mubr.msk.f32.mxu1 %vm106_vm0, %v71_v51  ;;  %2408 = vmatprep.subr.bf16.mxu1 %v2407_v52  ;;  %v47_v11 = vld [vmem:[%s3224_s0 + $0xa0] sm:$0xff]  ;;  %v78_v12 = vld [vmem:[%s3224_s0 + $0x198] sm:$0xff]  ;;  %v48_v14 = vld [vmem:[%s3224_s0 + $0xa8] sm:$0xff] }
  0x2b   :  { %v79_v13 = vld [vmem:[%s3224_s0 + $0x1a0] sm:$0xff]  ;;  %v49_v15 = vld [vmem:[%s3224_s0 + $0xb0] sm:$0xff]  ;;  %v80_v16 = vld [vmem:[%s3224_s0 + $0x1a8] sm:$0xff] }
  0x2c   :  { %2042 = vmatmul.mubr.msk.f32.gmra.mrb[12].mxu0 %vm106_vm0, %v40_v55  ;;  %2410 = vmatpush3.bf16.msra.mxu1 %v2407_v52  ;;  %v81_v17 = vld [vmem:[%s3224_s0 + $0x1b0] sm:$0xff]  ;;  %v50_v18 = vld [vmem:[%s3224_s0 + $0xb8] sm:$0xff]  ;;  %v51_v19 = vld [vmem:[%s3224_s0 + $0xc0] sm:$0xff] }
  0x2d   :  { %2044 = vmatprep.mubr.msk.f32.mxu0 %vm106_vm0, %v41_v56  ;;  %2090 = vmatmul.mubr.msk.f32.gmra.mrb[12].mxu1 %vm106_vm0, %v72_v57  ;;  %v82_v20 = vld [vmem:[%s3224_s0 + $0x1b8] sm:$0xff]  ;;  %v83_v21 = vld [vmem:[%s3224_s0 + $0x1c0] sm:$0xff]  ;;  %v52_v22 = vld [vmem:[%s3224_s0 + $0xc8] sm:$0xff] }
  0x2e   :  { %2092 = vmatprep.mubr.msk.f32.mxu1 %vm106_vm0, %v73_v58  ;;  %2412 = vmatprep.subr.bf16.mxu1 %v2411_v59  ;;  %v53_v23 = vld [vmem:[%s3224_s0 + $0xd0] sm:$0xff]  ;;  %v84_v24 = vld [vmem:[%s3224_s0 + $0x1c8] sm:$0xff]  ;;  %v54_v26 = vld [vmem:[%s3224_s0 + $0xd8] sm:$0xff] }
  0x2f   :  { %v85_v25 = vld [vmem:[%s3224_s0 + $0x1d0] sm:$0xff]  ;;  %v55_v27 = vld [vmem:[%s3224_s0 + $0xe0] sm:$0xff]  ;;  %v86_v28 = vld [vmem:[%s3224_s0 + $0x1d8] sm:$0xff] }
  0x30   :  { %2045 = vmatmul.mubr.msk.f32.gmra.mrb[14].mxu0 %vm106_vm0, %v42_v62  ;;  %2414 = vmatpush3.bf16.msra.mxu1 %v2411_v59  ;;  %v87_v29 = vld [vmem:[%s3224_s0 + $0x1e0] sm:$0xff]  ;;  %v56_v30 = vld [vmem:[%s3224_s0 + $0xe8] sm:$0xff]  ;;  %v57_v31 = vld [vmem:[%s3224_s0 + $0xf0] sm:$0xff] }
  0x31   :  { %2047 = vmatprep.mubr.msk.f32.mxu0 %vm106_vm0, %v43_v63  ;;  %2093 = vmatmul.mubr.msk.f32.gmra.mrb[14].mxu1 %vm106_vm0, %v74_v0  ;;  %v88_v32 = vld [vmem:[%s3224_s0 + $0x1e8] sm:$0xff]  ;;  %v89_v33 = vld [vmem:[%s3224_s0 + $0x1f0] sm:$0xff]  ;;  %v58_v34 = vld [vmem:[%s3224_s0 + $0xf8] sm:$0xff] }
  0x32   :  { %2095 = vmatprep.mubr.msk.f32.mxu1 %vm106_vm0, %v75_v1  ;;  %2416 = vmatprep.subr.bf16.mxu1 %v2415_v2  ;;  %v90_v35 = vld [vmem:[%s3224_s0 + $0x1f8] sm:$0xff]  ;;  %v2864_v36 = vld [vmem:[%s3226_s2] ss:$0 sm:$0xff]  ;;  %v1221_v45 = vld [vmem:[%s3229_s5 + $0x8] sm:$0xff] }
  0x33   :  { %v1220_v44 = vld [vmem:[%s3229_s5] sm:$0xff]  ;;  %v1222_v46 = vld [vmem:[%s3229_s5 + $0x10] sm:$0xff]  ;;  %v1223_v50 = vld [vmem:[%s3229_s5 + $0x18] sm:$0xff] }
  0x34   :  { %2048 = vmatmul.mubr.msk.f32.gmra.mrb[16].mxu0 %vm106_vm0, %v44_v5  ;;  %2418 = vmatpush3.bf16.msra.mxu1 %v2415_v2  ;;  %v2423_v49 = vpack.c.bf16 %v1221_v45, %v1220_v44  ;;  %v2427_v55 = vpack.c.bf16 %v1223_v50, %v1222_v46  ;;  %v1224_v56 = vld [vmem:[%s3229_s5 + $0x20] sm:$0xff]  ;;  %v1225_v57 = vld [vmem:[%s3229_s5 + $0x28] sm:$0xff]  ;;  %v1226_v5 = vld [vmem:[%s3229_s5 + $0x30] sm:$0xff] }
  0x35   :  { %2050 = vmatprep.mubr.msk.f32.mxu0 %vm106_vm0, %v45_v6  ;;  %2096 = vmatmul.mubr.msk.f32.gmra.mrb[16].mxu1 %vm106_vm0, %v76_v7  ;;  %v2431_v0 = vpack.c.bf16 %v1225_v57, %v1224_v56  ;;  %v1227_v6 = vld [vmem:[%s3229_s5 + $0x38] sm:$0xff] }
  0x36   :  { %2098 = vmatprep.mubr.msk.f32.mxu1 %vm106_vm0, %v77_v8  ;;  %2420 = vmatprep.subr.bf16.mxu1 %v2419_v9 }
  0x37   :  { %2424 = vmatprep.subr.bf16.mxu0 %v2423_v49 }
  0x38   :  { %2051 = vmatmul.mubr.msk.f32.gmra.mrb[18].mxu0 %vm106_vm0, %v46_v10  ;;  %2422 = vmatpush3.bf16.msra.mxu1 %v2419_v9 }
  0x39   :  { %2053 = vmatprep.mubr.msk.f32.mxu0 %vm106_vm0, %v47_v11  ;;  %2099 = vmatmul.mubr.msk.f32.gmra.mrb[18].mxu1 %vm106_vm0, %v78_v12 }
  0x3a   :  { %2101 = vmatprep.mubr.msk.f32.mxu1 %vm106_vm0, %v79_v13  ;;  %2426 = vmatpush3.bf16.msra.mxu0 %v2423_v49  ;;  %v2435_v13 = vpack.c.bf16 %v1227_v6, %v1226_v5 }
  0x3b   :  { %2428 = vmatprep.subr.bf16.mxu0 %v2427_v55 }
  0x3c   :  { %2054 = vmatmul.mubr.msk.f32.gmra.mrb[20].mxu0 %vm106_vm0, %v48_v14 }
  0x3d   :  { %2056 = vmatprep.mubr.msk.f32.mxu0 %vm106_vm0, %v49_v15  ;;  %2102 = vmatmul.mubr.msk.f32.gmra.mrb[20].mxu1 %vm106_vm0, %v80_v16 }
  0x3e   :  { %2104 = vmatprep.mubr.msk.f32.mxu1 %vm106_vm0, %v81_v17  ;;  %2430 = vmatpush3.bf16.msra.mxu0 %v2427_v55 }
  0x3f   :  { %2432 = vmatprep.subr.bf16.mxu0 %v2431_v0 }
  0x40   :  { %2057 = vmatmul.mubr.msk.f32.gmra.mrb[22].mxu0 %vm106_vm0, %v50_v18  ;;  %v1228_v18 = vld [vmem:[%s3229_s5 + $0x40] sm:$0xff] }
  0x41   :  { %2059 = vmatprep.mubr.msk.f32.mxu0 %vm106_vm0, %v51_v19  ;;  %2105 = vmatmul.mubr.msk.f32.gmra.mrb[22].mxu1 %vm106_vm0, %v82_v20  ;;  %v1229_v19 = vld [vmem:[%s3229_s5 + $0x48] sm:$0xff] }
  0x42   :  { %2107 = vmatprep.mubr.msk.f32.mxu1 %vm106_vm0, %v83_v21  ;;  %2434 = vmatpush3.bf16.msra.mxu0 %v2431_v0 }
  0x43   :  { %2436 = vmatprep.subr.bf16.mxu0 %v2435_v13 }
  0x44   :  { %2060 = vmatmul.mubr.msk.f32.gmra.mrb[24].mxu0 %vm106_vm0, %v52_v22 }
  0x45   :  { %2062 = vmatprep.mubr.msk.f32.mxu0 %vm106_vm0, %v53_v23  ;;  %2108 = vmatmul.mubr.msk.f32.gmra.mrb[24].mxu1 %vm106_vm0, %v84_v24 }
  0x46   :  { %2110 = vmatprep.mubr.msk.f32.mxu1 %vm106_vm0, %v85_v25  ;;  %2438 = vmatpush3.bf16.msra.mxu0 %v2435_v13 }
  0x48   :  { %2063 = vmatmul.mubr.msk.f32.gmra.mrb[26].mxu0 %vm106_vm0, %v54_v26  ;;  %v2439_v26 = vpack.c.bf16 %v1229_v19, %v1228_v18 }
  0x49   :  { %2065 = vmatprep.mubr.msk.f32.mxu0 %vm106_vm0, %v55_v27  ;;  %2111 = vmatmul.mubr.msk.f32.gmra.mrb[26].mxu1 %vm106_vm0, %v86_v28 }
  0x4a   :  { %2113 = vmatprep.mubr.msk.f32.mxu1 %vm106_vm0, %v87_v29  ;;  %2440 = vmatprep.subr.bf16.mxu0 %v2439_v26 }
  0x4b   :  { %2442 = vmatpush3.bf16.msra.mxu0 %v2439_v26 }
  0x4c   :  { %2066 = vmatmul.mubr.msk.f32.gmra.mrb[28].mxu0 %vm106_vm0, %v56_v30 }
  0x4d   :  { %2068 = vmatprep.mubr.msk.f32.mxu0 %vm106_vm0, %v57_v31  ;;  %2114 = vmatmul.mubr.msk.f32.gmra.mrb[28].mxu1 %vm106_vm0, %v88_v32  ;;  %v1230_v31 = vld [vmem:[%s3229_s5 + $0x50] sm:$0xff]  ;;  %v1231_v32 = vld [vmem:[%s3229_s5 + $0x58] sm:$0xff] }
  0x4e   :  { %2116 = vmatprep.mubr.msk.f32.mxu1 %vm106_vm0, %v89_v33 }
  0x50   :  { %2069 = vmatmul.mubr.msk.f32.gmra.mrb[30].mxu0 %vm106_vm0, %v58_v34 }
  0x51   :  { %2117 = vmatmul.mubr.msk.f32.gmra.mrb[30].mxu1 %vm106_vm0, %v90_v35 }
  0xe7   :  { %v2025_v37 = vpop.f32.mrb[0].mxu0 }
  0xe8   :  { %v371_v38 = vadd.f32 %v2025_v37, %v2864_v36  ;;  %v365_v39 = vpop.f32.mrb[1].mxu0  ;;  %v2073_v40 = vpop.f32.mrb[0].mxu1 }
  0xe9   :  { %v366_v41 = vadd.f32 %v2864_v36, %v365_v39  ;;  %v2869_v42 = vadd.f32 %v2073_v40, %v2864_v36  ;;  %v2871_v43 = vpop.f32.mrb[1].mxu1  ;;  %v2443_v40 = vpack.c.bf16 %v1231_v32, %v1230_v31 }
  0xea   :  { %v685_v51 = vmax.f32 %v371_v38, 0.0 }
  0xeb   :  { %v684_v47 = vmax.f32 %v366_v41, 0.0  ;;  %v2028_v48 = vpop.f32.mrb[2].mxu0  ;;  %2444 = vmatprep.subr.bf16.mxu0 %v2443_v40 }
  0xec   :  { %v381_v52 = vadd.f32 %v2028_v48, %v2864_v36  ;;  %v375_v53 = vpop.f32.mrb[3].mxu0  ;;  %v2076_v54 = vpop.f32.mrb[2].mxu1  ;;  %v1233_v48 = vld [vmem:[%s3229_s5 + $0x68] sm:$0xff]  ;;  %2446 = vmatpush3.bf16.msra.mxu0 %v2443_v40 }
  0xed   :  { %v376_v58 = vadd.f32 %v2864_v36, %v375_v53  ;;  %2151 = vmatprep.mubr.f32.mxu1 %v684_v47  ;;  %v2894_v59 = vadd.f32 %v2076_v54, %v2864_v36  ;;  %v535_v60 = vpop.f32.mrb[3].mxu1  ;;  %v1232_v47 = vld [vmem:[%s3229_s5 + $0x60] sm:$0xff] }
  0xee   :  { %2152 = vmatmul.mubr.f32.vlgmr.msra.gmra.mrb[32].mxu1 %v685_v51  ;;  %v2897_v61 = vadd.f32 %v2864_v36, %v535_v60  ;;  %v687_v1 = vmax.f32 %v381_v52, 0.0  ;;  %v2447_v55 = vpack.c.bf16 %v1233_v48, %v1232_v47 }
  0xef   :  { %v686_v62 = vmax.f32 %v376_v58, 0.0  ;;  %v2031_v63 = vpop.f32.mrb[4].mxu0 }
  0xf0   :  { %v391_v2 = vadd.f32 %v2031_v63, %v2864_v36  ;;  %v385_v3 = vpop.f32.mrb[5].mxu0  ;;  %v2079_v4 = vpop.f32.mrb[4].mxu1  ;;  %v1235_v63 = vld [vmem:[%s3229_s5 + $0x78] sm:$0xff]  ;;  %2448 = vmatprep.subr.bf16.mxu0 %v2447_v55 }
  0xf1   :  { %v386_v7 = vadd.f32 %v2864_v36, %v385_v3  ;;  %2154 = vmatprep.mubr.f32.mxu1 %v686_v62  ;;  %v2908_v8 = vadd.f32 %v2079_v4, %v2864_v36  ;;  %v545_v9 = vpop.f32.mrb[5].mxu1  ;;  %v1234_v62 = vld [vmem:[%s3229_s5 + $0x70] sm:$0xff]  ;;  %2450 = vmatpush3.bf16.msra.mxu0 %v2447_v55 }
  0xf2   :  { %2155 = vmatmul.mubr.f32.gmra.mrb[34].mxu1 %v687_v1  ;;  %v2911_v10 = vadd.f32 %v2864_v36, %v545_v9  ;;  %v689_v14 = vmax.f32 %v391_v2, 0.0  ;;  %v2451_v6 = vpack.c.bf16 %v1235_v63, %v1234_v62 }
  0xf3   :  { %v688_v11 = vmax.f32 %v386_v7, 0.0  ;;  %v2034_v12 = vpop.f32.mrb[6].mxu0 }
  0xf4   :  { %v401_v15 = vadd.f32 %v2034_v12, %v2864_v36  ;;  %v395_v16 = vpop.f32.mrb[7].mxu0  ;;  %v2082_v17 = vpop.f32.mrb[6].mxu1  ;;  %2452 = vmatprep.subr.bf16.mxu0 %v2451_v6 }
  0xf5   :  { %v396_v20 = vadd.f32 %v2864_v36, %v395_v16  ;;  %2157 = vmatprep.mubr.f32.mxu1 %v688_v11  ;;  %v2922_v21 = vadd.f32 %v2082_v17, %v2864_v36  ;;  %v555_v22 = vpop.f32.mrb[7].mxu1  ;;  %2454 = vmatpush3.bf16.msra.mxu0 %v2451_v6 }
  0xf6   :  { %2158 = vmatmul.mubr.f32.gmra.mrb[36].mxu1 %v689_v14  ;;  %v2925_v23 = vadd.f32 %v2864_v36, %v555_v22  ;;  %v691_v27 = vmax.f32 %v401_v15, 0.0 }
  0xf7   :  { %v690_v24 = vmax.f32 %v396_v20, 0.0  ;;  %v2037_v25 = vpop.f32.mrb[8].mxu0 }
  0xf8   :  { %v411_v28 = vadd.f32 %v2037_v25, %v2864_v36  ;;  %v405_v29 = vpop.f32.mrb[9].mxu0  ;;  %v2085_v30 = vpop.f32.mrb[8].mxu1 }
  0xf9   :  { %v406_v33 = vadd.f32 %v2864_v36, %v405_v29  ;;  %2160 = vmatprep.mubr.f32.mxu1 %v690_v24  ;;  %v2936_v34 = vadd.f32 %v2085_v30, %v2864_v36  ;;  %v565_v35 = vpop.f32.mrb[9].mxu1 }
  0xfa   :  { %2161 = vmatmul.mubr.f32.gmra.mrb[38].mxu1 %v691_v27  ;;  %v2939_v37 = vadd.f32 %v2864_v36, %v565_v35  ;;  %v693_v41 = vmax.f32 %v411_v28, 0.0 }
  0xfb   :  { %v692_v38 = vmax.f32 %v406_v33, 0.0  ;;  %v2040_v39 = vpop.f32.mrb[10].mxu0 }
  0xfc   :  { %v421_v44 = vadd.f32 %v2040_v39, %v2864_v36  ;;  %v415_v45 = vpop.f32.mrb[11].mxu0  ;;  %v2088_v46 = vpop.f32.mrb[10].mxu1 }
  0xfd   :  { %v416_v49 = vadd.f32 %v2864_v36, %v415_v45  ;;  %2163 = vmatprep.mubr.f32.mxu1 %v692_v38  ;;  %v2950_v50 = vadd.f32 %v2088_v46, %v2864_v36  ;;  %v575_v51 = vpop.f32.mrb[11].mxu1 }
  0xfe   :  { %2164 = vmatmul.mubr.f32.gmra.mrb[40].mxu1 %v693_v41  ;;  %v2953_v52 = vadd.f32 %v2864_v36, %v575_v51  ;;  %v695_v56 = vmax.f32 %v421_v44, 0.0 }
  0xff   :  { %v694_v53 = vmax.f32 %v416_v49, 0.0  ;;  %v2043_v54 = vpop.f32.mrb[12].mxu0 }
 0x100   :  { %v431_v57 = vadd.f32 %v2043_v54, %v2864_v36  ;;  %v425_v58 = vpop.f32.mrb[13].mxu0  ;;  %v2091_v60 = vpop.f32.mrb[12].mxu1 }
 0x101   :  { %v426_v0 = vadd.f32 %v2864_v36, %v425_v58  ;;  %2166 = vmatprep.mubr.f32.mxu1 %v694_v53  ;;  %v2964_v1 = vadd.f32 %v2091_v60, %v2864_v36  ;;  %v585_v2 = vpop.f32.mrb[13].mxu1 }
 0x102   :  { %2167 = vmatmul.mubr.f32.gmra.mrb[42].mxu1 %v695_v56  ;;  %v2967_v3 = vadd.f32 %v2864_v36, %v585_v2  ;;  %v697_v7 = vmax.f32 %v431_v57, 0.0 }
 0x103   :  { %v696_v4 = vmax.f32 %v426_v0, 0.0  ;;  %v2046_v5 = vpop.f32.mrb[14].mxu0 }
 0x104   :  { %v441_v9 = vadd.f32 %v2046_v5, %v2864_v36  ;;  %v435_v11 = vpop.f32.mrb[15].mxu0  ;;  %v2094_v12 = vpop.f32.mrb[14].mxu1 }
 0x105   :  { %v436_v13 = vadd.f32 %v2864_v36, %v435_v11  ;;  %2169 = vmatprep.mubr.f32.mxu1 %v696_v4  ;;  %v2972_v14 = vadd.f32 %v2094_v12, %v2864_v36  ;;  %v595_v15 = vpop.f32.mrb[15].mxu1 }
 0x106   :  { %2170 = vmatmul.mubr.f32.gmra.mrb[44].mxu1 %v697_v7  ;;  %v2975_v16 = vadd.f32 %v2864_v36, %v595_v15  ;;  %v699_v19 = vmax.f32 %v441_v9, 0.0 }
 0x107   :  { %v698_v17 = vmax.f32 %v436_v13, 0.0  ;;  %v2049_v18 = vpop.f32.mrb[16].mxu0 }
 0x108   :  { %v451_v20 = vadd.f32 %v2049_v18, %v2864_v36  ;;  %v445_v22 = vpop.f32.mrb[17].mxu0  ;;  %v2097_v24 = vpop.f32.mrb[16].mxu1 }
 0x109   :  { %v446_v25 = vadd.f32 %v2864_v36, %v445_v22  ;;  %2172 = vmatprep.mubr.f32.mxu1 %v698_v17  ;;  %v2980_v26 = vadd.f32 %v2097_v24, %v2864_v36  ;;  %v605_v27 = vpop.f32.mrb[17].mxu1 }
 0x10a   :  { %2173 = vmatmul.mubr.f32.gmra.mrb[46].mxu1 %v699_v19  ;;  %v2983_v28 = vadd.f32 %v2864_v36, %v605_v27  ;;  %v701_v31 = vmax.f32 %v451_v20, 0.0 }
 0x10b   :  { %v700_v29 = vmax.f32 %v446_v25, 0.0  ;;  %v2052_v30 = vpop.f32.mrb[18].mxu0 }
 0x10c   :  { %v461_v32 = vadd.f32 %v2052_v30, %v2864_v36  ;;  %v455_v33 = vpop.f32.mrb[19].mxu0  ;;  %v2100_v35 = vpop.f32.mrb[18].mxu1 }
 0x10d   :  { %v456_v38 = vadd.f32 %v2864_v36, %v455_v33  ;;  %2175 = vmatprep.mubr.f32.mxu1 %v700_v29  ;;  %v2988_v39 = vadd.f32 %v2100_v35, %v2864_v36  ;;  %v615_v40 = vpop.f32.mrb[19].mxu1 }
 0x10e   :  { %2176 = vmatmul.mubr.f32.gmra.mrb[48].mxu1 %v701_v31  ;;  %v2991_v41 = vadd.f32 %v2864_v36, %v615_v40  ;;  %v703_v46 = vmax.f32 %v461_v32, 0.0 }
 0x10f   :  { %v702_v44 = vmax.f32 %v456_v38, 0.0  ;;  %v2055_v45 = vpop.f32.mrb[20].mxu0 }
 0x110   :  { %v471_v47 = vadd.f32 %v2055_v45, %v2864_v36  ;;  %v465_v48 = vpop.f32.mrb[21].mxu0  ;;  %v2103_v49 = vpop.f32.mrb[20].mxu1 }
 0x111   :  { %v466_v51 = vadd.f32 %v2864_v36, %v465_v48  ;;  %2178 = vmatprep.mubr.f32.mxu1 %v702_v44  ;;  %v2996_v53 = vadd.f32 %v2103_v49, %v2864_v36  ;;  %v625_v54 = vpop.f32.mrb[21].mxu1 }
 0x112   :  { %2179 = vmatmul.mubr.f32.gmra.mrb[50].mxu1 %v703_v46  ;;  %v2999_v55 = vadd.f32 %v2864_v36, %v625_v54  ;;  %v705_v58 = vmax.f32 %v471_v47, 0.0 }
 0x113   :  { %v704_v56 = vmax.f32 %v466_v51, 0.0  ;;  %v2058_v57 = vpop.f32.mrb[22].mxu0 }
 0x114   :  { %v481_v60 = vadd.f32 %v2058_v57, %v2864_v36  ;;  %v475_v62 = vpop.f32.mrb[23].mxu0  ;;  %v2106_v63 = vpop.f32.mrb[22].mxu1  ;;  %v526_v57 = vadd.f32 %v2864_v36, %v2871_v43  ;;  %v718_v43 = vmax.f32 %v2897_v61, 0.0  ;;  %v723_v61 = vmax.f32 %v2922_v21, 0.0 }
 0x115   :  { %v476_v0 = vadd.f32 %v2864_v36, %v475_v62  ;;  %2181 = vmatprep.mubr.f32.mxu1 %v704_v56  ;;  %v3004_v2 = vadd.f32 %v2106_v63, %v2864_v36  ;;  %v635_v4 = vpop.f32.mrb[23].mxu1  ;;  %v732_v21 = vmax.f32 %v2983_v28, 0.0  ;;  %v737_v28 = vmax.f32 %v2996_v53, 0.0 }
 0x116   :  { %2182 = vmatmul.mubr.f32.gmra.mrb[52].mxu1 %v705_v58  ;;  %v3007_v5 = vadd.f32 %v2864_v36, %v635_v4  ;;  %v707_v9 = vmax.f32 %v481_v60, 0.0 }
 0x117   :  { %v706_v6 = vmax.f32 %v476_v0, 0.0  ;;  %v2061_v7 = vpop.f32.mrb[24].mxu0 }
 0x118   :  { %v491_v11 = vadd.f32 %v2061_v7, %v2864_v36  ;;  %v485_v12 = vpop.f32.mrb[25].mxu0  ;;  %v2109_v13 = vpop.f32.mrb[24].mxu1 }
 0x119   :  { %v486_v15 = vadd.f32 %v2864_v36, %v485_v12  ;;  %2184 = vmatprep.mubr.f32.mxu1 %v706_v6  ;;  %v3012_v17 = vadd.f32 %v2109_v13, %v2864_v36  ;;  %v645_v18 = vpop.f32.mrb[25].mxu1  ;;  %v717_v13 = vmax.f32 %v2869_v42, 0.0  ;;  %v726_v42 = vmax.f32 %v2953_v52, 0.0 }
 0x11a   :  { %2185 = vmatmul.mubr.f32.gmra.mrb[54].mxu1 %v707_v9  ;;  %v3015_v19 = vadd.f32 %v2864_v36, %v645_v18  ;;  %v709_v24 = vmax.f32 %v491_v11, 0.0  ;;  %v716_v11 = vmax.f32 %v526_v57, 0.0  ;;  %v719_v18 = vmax.f32 %v2894_v59, 0.0 }
 0x11b   :  { %v708_v20 = vmax.f32 %v486_v15, 0.0  ;;  %v2064_v22 = vpop.f32.mrb[26].mxu0  ;;  %v720_v15 = vmax.f32 %v2911_v10, 0.0  ;;  %v725_v10 = vmax.f32 %v2936_v34, 0.0  ;;  %v728_v59 = vmax.f32 %v2967_v3, 0.0 }
 0x11c   :  { %v501_v25 = vadd.f32 %v2064_v22, %v2864_v36  ;;  %v495_v27 = vpop.f32.mrb[27].mxu0  ;;  %v2112_v29 = vpop.f32.mrb[26].mxu1  ;;  %v724_v22 = vmax.f32 %v2939_v37, 0.0  ;;  %v729_v37 = vmax.f32 %v2964_v1, 0.0  ;;  %v731_v52 = vmax.f32 %v2972_v14, 0.0 }
 0x11d   :  { %v496_v30 = vadd.f32 %v2864_v36, %v495_v27  ;;  %2187 = vmatprep.mubr.f32.mxu1 %v708_v20  ;;  %v3020_v31 = vadd.f32 %v2112_v29, %v2864_v36  ;;  %v655_v32 = vpop.f32.mrb[27].mxu1  ;;  %v721_v20 = vmax.f32 %v2908_v8, 0.0  ;;  %v730_v8 = vmax.f32 %v2975_v16, 0.0 }
 0x11e   :  { %2188 = vmatmul.mubr.f32.gmra.mrb[56].mxu1 %v709_v24  ;;  %v3023_v33 = vadd.f32 %v2864_v36, %v655_v32  ;;  %v711_v40 = vmax.f32 %v501_v25, 0.0  ;;  %v734_v34 = vmax.f32 %v2991_v41, 0.0  ;;  %v733_v3 = vmax.f32 %v2980_v26, 0.0 }
 0x11f   :  { %v710_v35 = vmax.f32 %v496_v30, 0.0  ;;  %v2067_v38 = vpop.f32.mrb[28].mxu0  ;;  %v735_v16 = vmax.f32 %v2988_v39, 0.0  ;;  %v738_v1 = vmax.f32 %v3007_v5, 0.0  ;;  %v740_v14 = vmax.f32 %v3015_v19, 0.0 }
 0x120   :  { %v511_v44 = vadd.f32 %v2067_v38, %v2864_v36  ;;  %v505_v45 = vpop.f32.mrb[29].mxu0  ;;  %v2115_v46 = vpop.f32.mrb[28].mxu1  ;;  %v739_v41 = vmax.f32 %v3004_v2, 0.0  ;;  %v742_v26 = vmax.f32 %v3023_v33, 0.0  ;;  %v743_v5 = vmax.f32 %v3020_v31, 0.0 }
 0x121   :  { %v506_v47 = vadd.f32 %v2864_v36, %v505_v45  ;;  %2190 = vmatprep.mubr.f32.mxu1 %v710_v35  ;;  %v3028_v48 = vadd.f32 %v2115_v46, %v2864_v36  ;;  %v665_v49 = vpop.f32.mrb[29].mxu1 }
 0x122   :  { %2191 = vmatmul.mubr.f32.gmra.mrb[58].mxu1 %v711_v40  ;;  %v3031_v51 = vadd.f32 %v2864_v36, %v665_v49  ;;  %v713_v58 = vmax.f32 %v511_v44, 0.0 }
 0x123   :  { %v712_v54 = vmax.f32 %v506_v47, 0.0  ;;  %v2070_v56 = vpop.f32.mrb[30].mxu0  ;;  %v745_v19 = vmax.f32 %v3028_v48, 0.0 }
 0x124   :  { %v521_v60 = vadd.f32 %v2070_v56, %v2864_v36  ;;  %v515_v62 = vpop.f32.mrb[31].mxu0  ;;  %v2118_v63 = vpop.f32.mrb[30].mxu1  ;;  %v744_v39 = vmax.f32 %v3031_v51, 0.0 }
 0x125   :  { %v516_v0 = vadd.f32 %v2864_v36, %v515_v62  ;;  %2193 = vmatprep.mubr.f32.mxu1 %v712_v54  ;;  %v3038_v4 = vadd.f32 %v2118_v63, %v2864_v36  ;;  %v675_v6 = vpop.f32.mrb[31].mxu1 }
 0x126   :  { %2194 = vmatmul.mubr.f32.gmra.mrb[60].mxu1 %v713_v58  ;;  %v3041_v7 = vadd.f32 %v2864_v36, %v675_v6  ;;  %v715_v12 = vmax.f32 %v521_v60, 0.0  ;;  %v722_v36 = vmax.f32 %v2925_v23, 0.0  ;;  %v727_v23 = vmax.f32 %v2950_v50, 0.0 }
 0x127   :  { %v714_v9 = vmax.f32 %v516_v0, 0.0  ;;  %v736_v50 = vmax.f32 %v2999_v55, 0.0  ;;  %v741_v55 = vmax.f32 %v3012_v17, 0.0  ;;  %v747_v2 = vmax.f32 %v3038_v4, 0.0  ;;  %v3077_v17 = vld [vmem:[%s3228_s4] ss:$0 sm:$0xff] }
 0x128   :  { %v746_v53 = vmax.f32 %v3041_v7, 0.0 }
 0x129   :  { %2196 = vmatprep.mubr.f32.mxu1 %v714_v9 }
 0x12a   :  { %2197 = vmatmul.mubr.f32.gmra.mrb[62].mxu1 %v715_v12 }
 0x12b   :  { %2199 = vmatprep.mubr.f32.mxu1 %v716_v11 }
 0x12e   :  { %2200 = vmatmul.mubr.f32.gmra.mrb[64].mxu1 %v717_v13 }
 0x12f   :  { %2202 = vmatprep.mubr.f32.mxu1 %v718_v43 }
 0x132   :  { %2203 = vmatmul.mubr.f32.gmra.mrb[66].mxu1 %v719_v18 }
 0x133   :  { %2205 = vmatprep.mubr.f32.mxu1 %v720_v15 }
 0x136   :  { %2206 = vmatmul.mubr.f32.gmra.mrb[68].mxu1 %v721_v20 }
 0x137   :  { %2208 = vmatprep.mubr.f32.mxu1 %v722_v36 }
 0x13a   :  { %2209 = vmatmul.mubr.f32.gmra.mrb[70].mxu1 %v723_v61 }
 0x13b   :  { %2211 = vmatprep.mubr.f32.mxu1 %v724_v22 }
 0x13e   :  { %2212 = vmatmul.mubr.f32.gmra.mrb[72].mxu1 %v725_v10 }
 0x13f   :  { %2214 = vmatprep.mubr.f32.mxu1 %v726_v42 }
 0x142   :  { %2215 = vmatmul.mubr.f32.gmra.mrb[74].mxu1 %v727_v23 }
 0x143   :  { %2217 = vmatprep.mubr.f32.mxu1 %v728_v59 }
 0x146   :  { %2218 = vmatmul.mubr.f32.gmra.mrb[76].mxu1 %v729_v37 }
 0x147   :  { %2220 = vmatprep.mubr.f32.mxu1 %v730_v8 }
 0x14a   :  { %2221 = vmatmul.mubr.f32.gmra.mrb[78].mxu1 %v731_v52 }
 0x14b   :  { %2223 = vmatprep.mubr.f32.mxu1 %v732_v21 }
 0x14e   :  { %2224 = vmatmul.mubr.f32.gmra.mrb[80].mxu1 %v733_v3 }
 0x14f   :  { %2226 = vmatprep.mubr.f32.mxu1 %v734_v34 }
 0x152   :  { %2227 = vmatmul.mubr.f32.gmra.mrb[82].mxu1 %v735_v16 }
 0x153   :  { %2229 = vmatprep.mubr.f32.mxu1 %v736_v50 }
 0x156   :  { %2230 = vmatmul.mubr.f32.gmra.mrb[84].mxu1 %v737_v28 }
 0x157   :  { %2232 = vmatprep.mubr.f32.mxu1 %v738_v1 }
 0x15a   :  { %2233 = vmatmul.mubr.f32.gmra.mrb[86].mxu1 %v739_v41 }
 0x15b   :  { %2235 = vmatprep.mubr.f32.mxu1 %v740_v14 }
 0x15e   :  { %2236 = vmatmul.mubr.f32.gmra.mrb[88].mxu1 %v741_v55 }
 0x15f   :  { %2238 = vmatprep.mubr.f32.mxu1 %v742_v26 }
 0x162   :  { %2239 = vmatmul.mubr.f32.gmra.mrb[90].mxu1 %v743_v5 }
 0x163   :  { %2241 = vmatprep.mubr.f32.mxu1 %v744_v39 }
 0x166   :  { %2242 = vmatmul.mubr.f32.gmra.mrb[92].mxu1 %v745_v19 }
 0x167   :  { %2244 = vmatprep.mubr.f32.mxu1 %v746_v53 }
 0x16a   :  { %2245 = vmatmul.mubr.f32.gmra.mrb[94].mxu1 %v747_v2 }
 0x1c1   :  { %v2153_v24 = vpop.f32.mrb[32].mxu1 }
 0x1c2   :  { %v843_v25 = vadd.f32 %v2153_v24, %v3077_v17  ;;  %v837_v27 = vpop.f32.mrb[33].mxu1 }
 0x1c3   :  { %v838_v29 = vadd.f32 %v3077_v17, %v837_v27 }
 0x1c4   :  { %v1157_v32 = vmax.f32 %v843_v25, 0.0 }
 0x1c5   :  { %v1156_v30 = vmax.f32 %v838_v29, 0.0  ;;  %v2156_v31 = vpop.f32.mrb[34].mxu1 }
 0x1c6   :  { %v853_v33 = vadd.f32 %v2156_v31, %v3077_v17  ;;  %v847_v35 = vpop.f32.mrb[35].mxu1 }
 0x1c7   :  { %v848_v38 = vadd.f32 %v3077_v17, %v847_v35  ;;  %2279 = vmatprep.mubr.f32.mxu0 %v1156_v30 }
 0x1c8   :  { %2280 = vmatmul.mubr.f32.vlgmr.msra.gmra.mrb[32].mxu0 %v1157_v32  ;;  %v1159_v45 = vmax.f32 %v853_v33, 0.0 }
 0x1c9   :  { %v1158_v40 = vmax.f32 %v848_v38, 0.0  ;;  %v2159_v44 = vpop.f32.mrb[36].mxu1 }
 0x1ca   :  { %v863_v46 = vadd.f32 %v2159_v44, %v3077_v17  ;;  %v857_v47 = vpop.f32.mrb[37].mxu1 }
 0x1cb   :  { %v858_v48 = vadd.f32 %v3077_v17, %v857_v47  ;;  %2282 = vmatprep.mubr.f32.mxu0 %v1158_v40 }
 0x1cc   :  { %2283 = vmatmul.mubr.f32.gmra.mrb[34].mxu0 %v1159_v45  ;;  %v1161_v54 = vmax.f32 %v863_v46, 0.0 }
 0x1cd   :  { %v1160_v49 = vmax.f32 %v858_v48, 0.0  ;;  %v2162_v51 = vpop.f32.mrb[38].mxu1 }
 0x1ce   :  { %v873_v56 = vadd.f32 %v2162_v51, %v3077_v17  ;;  %v867_v57 = vpop.f32.mrb[39].mxu1 }
 0x1cf   :  { %v868_v58 = vadd.f32 %v3077_v17, %v867_v57  ;;  %2285 = vmatprep.mubr.f32.mxu0 %v1160_v49 }
 0x1d0   :  { %2286 = vmatmul.mubr.f32.gmra.mrb[36].mxu0 %v1161_v54  ;;  %v1163_v63 = vmax.f32 %v873_v56, 0.0 }
 0x1d1   :  { %v1162_v60 = vmax.f32 %v868_v58, 0.0  ;;  %v2165_v62 = vpop.f32.mrb[40].mxu1 }
 0x1d2   :  { %v883_v0 = vadd.f32 %v2165_v62, %v3077_v17  ;;  %v877_v4 = vpop.f32.mrb[41].mxu1 }
 0x1d3   :  { %v878_v6 = vadd.f32 %v3077_v17, %v877_v4  ;;  %2288 = vmatprep.mubr.f32.mxu0 %v1162_v60 }
 0x1d4   :  { %2289 = vmatmul.mubr.f32.gmra.mrb[38].mxu0 %v1163_v63  ;;  %v1165_v11 = vmax.f32 %v883_v0, 0.0 }
 0x1d5   :  { %v1164_v7 = vmax.f32 %v878_v6, 0.0  ;;  %v2168_v9 = vpop.f32.mrb[42].mxu1 }
 0x1d6   :  { %v893_v12 = vadd.f32 %v2168_v9, %v3077_v17  ;;  %v887_v43 = vpop.f32.mrb[43].mxu1 }
 0x1d7   :  { %v888_v13 = vadd.f32 %v3077_v17, %v887_v43  ;;  %2291 = vmatprep.mubr.f32.mxu0 %v1164_v7 }
 0x1d8   :  { %2292 = vmatmul.mubr.f32.gmra.mrb[40].mxu0 %v1165_v11  ;;  %v1167_v36 = vmax.f32 %v893_v12, 0.0 }
 0x1d9   :  { %v1166_v15 = vmax.f32 %v888_v13, 0.0  ;;  %v2171_v18 = vpop.f32.mrb[44].mxu1 }
 0x1da   :  { %v903_v20 = vadd.f32 %v2171_v18, %v3077_v17  ;;  %v897_v22 = vpop.f32.mrb[45].mxu1 }
 0x1db   :  { %v898_v61 = vadd.f32 %v3077_v17, %v897_v22  ;;  %2294 = vmatprep.mubr.f32.mxu0 %v1166_v15 }
 0x1dc   :  { %2295 = vmatmul.mubr.f32.gmra.mrb[42].mxu0 %v1167_v36  ;;  %v1169_v59 = vmax.f32 %v903_v20, 0.0 }
 0x1dd   :  { %v1168_v42 = vmax.f32 %v898_v61, 0.0  ;;  %v2174_v10 = vpop.f32.mrb[46].mxu1 }
 0x1de   :  { %v913_v23 = vadd.f32 %v2174_v10, %v3077_v17  ;;  %v907_v8 = vpop.f32.mrb[47].mxu1 }
 0x1df   :  { %v908_v37 = vadd.f32 %v3077_v17, %v907_v8  ;;  %2297 = vmatprep.mubr.f32.mxu0 %v1168_v42 }
 0x1e0   :  { %2298 = vmatmul.mubr.f32.gmra.mrb[44].mxu0 %v1169_v59  ;;  %v1171_v34 = vmax.f32 %v913_v23, 0.0 }
 0x1e1   :  { %v1170_v21 = vmax.f32 %v908_v37, 0.0  ;;  %v2177_v52 = vpop.f32.mrb[48].mxu1 }
 0x1e2   :  { %v923_v3 = vadd.f32 %v2177_v52, %v3077_v17  ;;  %v917_v50 = vpop.f32.mrb[49].mxu1 }
 0x1e3   :  { %v918_v16 = vadd.f32 %v3077_v17, %v917_v50  ;;  %2300 = vmatprep.mubr.f32.mxu0 %v1170_v21 }
 0x1e4   :  { %2301 = vmatmul.mubr.f32.gmra.mrb[46].mxu0 %v1171_v34  ;;  %v1173_v14 = vmax.f32 %v923_v3, 0.0 }
 0x1e5   :  { %v1172_v1 = vmax.f32 %v918_v16, 0.0  ;;  %v2180_v28 = vpop.f32.mrb[50].mxu1 }
 0x1e6   :  { %v933_v41 = vadd.f32 %v2180_v28, %v3077_v17  ;;  %v927_v26 = vpop.f32.mrb[51].mxu1 }
 0x1e7   :  { %v928_v55 = vadd.f32 %v3077_v17, %v927_v26  ;;  %2303 = vmatprep.mubr.f32.mxu0 %v1172_v1 }
 0x1e8   :  { %2304 = vmatmul.mubr.f32.gmra.mrb[48].mxu0 %v1173_v14  ;;  %v1175_v53 = vmax.f32 %v933_v41, 0.0 }
 0x1e9   :  { %v1174_v39 = vmax.f32 %v928_v55, 0.0  ;;  %v2183_v5 = vpop.f32.mrb[52].mxu1 }
 0x1ea   :  { %v943_v19 = vadd.f32 %v2183_v5, %v3077_v17  ;;  %v937_v2 = vpop.f32.mrb[53].mxu1 }
 0x1eb   :  { %v938_v24 = vadd.f32 %v3077_v17, %v937_v2  ;;  %2306 = vmatprep.mubr.f32.mxu0 %v1174_v39 }
 0x1ec   :  { %2307 = vmatmul.mubr.f32.gmra.mrb[50].mxu0 %v1175_v53  ;;  %v1177_v29 = vmax.f32 %v943_v19, 0.0 }
 0x1ed   :  { %v1176_v25 = vmax.f32 %v938_v24, 0.0  ;;  %v2186_v27 = vpop.f32.mrb[54].mxu1 }
 0x1ee   :  { %v953_v30 = vadd.f32 %v2186_v27, %v3077_v17  ;;  %v947_v31 = vpop.f32.mrb[55].mxu1 }
 0x1ef   :  { %v948_v32 = vadd.f32 %v3077_v17, %v947_v31  ;;  %2309 = vmatprep.mubr.f32.mxu0 %v1176_v25 }
 0x1f0   :  { %2310 = vmatmul.mubr.f32.gmra.mrb[52].mxu0 %v1177_v29  ;;  %v1179_v38 = vmax.f32 %v953_v30, 0.0 }
 0x1f1   :  { %v1178_v33 = vmax.f32 %v948_v32, 0.0  ;;  %v2189_v35 = vpop.f32.mrb[56].mxu1 }
 0x1f2   :  { %v963_v40 = vadd.f32 %v2189_v35, %v3077_v17  ;;  %v957_v44 = vpop.f32.mrb[57].mxu1 }
 0x1f3   :  { %v958_v45 = vadd.f32 %v3077_v17, %v957_v44  ;;  %2312 = vmatprep.mubr.f32.mxu0 %v1178_v33 }
 0x1f4   :  { %2313 = vmatmul.mubr.f32.gmra.mrb[54].mxu0 %v1179_v38  ;;  %v1181_v48 = vmax.f32 %v963_v40, 0.0 }
 0x1f5   :  { %v1180_v46 = vmax.f32 %v958_v45, 0.0  ;;  %v2192_v47 = vpop.f32.mrb[58].mxu1 }
 0x1f6   :  { %v973_v49 = vadd.f32 %v2192_v47, %v3077_v17  ;;  %v967_v51 = vpop.f32.mrb[59].mxu1 }
 0x1f7   :  { %v968_v54 = vadd.f32 %v3077_v17, %v967_v51  ;;  %2315 = vmatprep.mubr.f32.mxu0 %v1180_v46 }
 0x1f8   :  { %2316 = vmatmul.mubr.f32.gmra.mrb[56].mxu0 %v1181_v48  ;;  %v1183_v58 = vmax.f32 %v973_v49, 0.0 }
 0x1f9   :  { %v1182_v56 = vmax.f32 %v968_v54, 0.0  ;;  %v2195_v57 = vpop.f32.mrb[60].mxu1 }
 0x1fa   :  { %v983_v60 = vadd.f32 %v2195_v57, %v3077_v17  ;;  %v977_v62 = vpop.f32.mrb[61].mxu1 }
 0x1fb   :  { %v978_v63 = vadd.f32 %v3077_v17, %v977_v62  ;;  %2318 = vmatprep.mubr.f32.mxu0 %v1182_v56 }
 0x1fc   :  { %2319 = vmatmul.mubr.f32.gmra.mrb[58].mxu0 %v1183_v58  ;;  %v1185_v6 = vmax.f32 %v983_v60, 0.0 }
 0x1fd   :  { %v1184_v0 = vmax.f32 %v978_v63, 0.0  ;;  %v2198_v4 = vpop.f32.mrb[62].mxu1 }
 0x1fe   :  { %v993_v7 = vadd.f32 %v2198_v4, %v3077_v17  ;;  %v987_v9 = vpop.f32.mrb[63].mxu1 }
 0x1ff   :  { %v988_v11 = vadd.f32 %v3077_v17, %v987_v9  ;;  %2321 = vmatprep.mubr.f32.mxu0 %v1184_v0 }
 0x200   :  { %2322 = vmatmul.mubr.f32.gmra.mrb[60].mxu0 %v1185_v6  ;;  %v1187_v13 = vmax.f32 %v993_v7, 0.0 }
 0x201   :  { %v1186_v12 = vmax.f32 %v988_v11, 0.0  ;;  %v2201_v43 = vpop.f32.mrb[64].mxu1 }
 0x202   :  { %v1003_v15 = vadd.f32 %v2201_v43, %v3077_v17  ;;  %v997_v18 = vpop.f32.mrb[65].mxu1 }
 0x203   :  { %v998_v36 = vadd.f32 %v3077_v17, %v997_v18  ;;  %2324 = vmatprep.mubr.f32.mxu0 %v1186_v12 }
 0x204   :  { %2325 = vmatmul.mubr.f32.gmra.mrb[62].mxu0 %v1187_v13  ;;  %v1189_v61 = vmax.f32 %v1003_v15, 0.0 }
 0x205   :  { %v1188_v20 = vmax.f32 %v998_v36, 0.0  ;;  %v2204_v22 = vpop.f32.mrb[66].mxu1 }
 0x206   :  { %v1013_v42 = vadd.f32 %v2204_v22, %v3077_v17  ;;  %v1007_v10 = vpop.f32.mrb[67].mxu1 }
 0x207   :  { %v1008_v59 = vadd.f32 %v3077_v17, %v1007_v10  ;;  %2327 = vmatprep.mubr.f32.mxu0 %v1188_v20 }
 0x208   :  { %2328 = vmatmul.mubr.f32.gmra.mrb[64].mxu0 %v1189_v61  ;;  %v1191_v37 = vmax.f32 %v1013_v42, 0.0 }
 0x209   :  { %v1190_v23 = vmax.f32 %v1008_v59, 0.0  ;;  %v2207_v8 = vpop.f32.mrb[68].mxu1 }
 0x20a   :  { %v1023_v21 = vadd.f32 %v2207_v8, %v3077_v17  ;;  %v1017_v52 = vpop.f32.mrb[69].mxu1 }
 0x20b   :  { %v1018_v34 = vadd.f32 %v3077_v17, %v1017_v52  ;;  %2330 = vmatprep.mubr.f32.mxu0 %v1190_v23 }
 0x20c   :  { %2331 = vmatmul.mubr.f32.gmra.mrb[66].mxu0 %v1191_v37  ;;  %v1193_v16 = vmax.f32 %v1023_v21, 0.0 }
 0x20d   :  { %v1192_v3 = vmax.f32 %v1018_v34, 0.0  ;;  %v2210_v50 = vpop.f32.mrb[70].mxu1 }
 0x20e   :  { %v1033_v1 = vadd.f32 %v2210_v50, %v3077_v17  ;;  %v1027_v28 = vpop.f32.mrb[71].mxu1 }
 0x20f   :  { %v1028_v14 = vadd.f32 %v3077_v17, %v1027_v28  ;;  %2333 = vmatprep.mubr.f32.mxu0 %v1192_v3 }
 0x210   :  { %2334 = vmatmul.mubr.f32.gmra.mrb[68].mxu0 %v1193_v16  ;;  %v1195_v55 = vmax.f32 %v1033_v1, 0.0 }
 0x211   :  { %v1194_v41 = vmax.f32 %v1028_v14, 0.0  ;;  %v2213_v26 = vpop.f32.mrb[72].mxu1 }
 0x212   :  { %v1043_v39 = vadd.f32 %v2213_v26, %v3077_v17  ;;  %v1037_v5 = vpop.f32.mrb[73].mxu1 }
 0x213   :  { %v1038_v53 = vadd.f32 %v3077_v17, %v1037_v5  ;;  %2336 = vmatprep.mubr.f32.mxu0 %v1194_v41 }
 0x214   :  { %2337 = vmatmul.mubr.f32.gmra.mrb[70].mxu0 %v1195_v55  ;;  %v1197_v24 = vmax.f32 %v1043_v39, 0.0 }
 0x215   :  { %v1196_v19 = vmax.f32 %v1038_v53, 0.0  ;;  %v2216_v2 = vpop.f32.mrb[74].mxu1 }
 0x216   :  { %v1053_v25 = vadd.f32 %v2216_v2, %v3077_v17  ;;  %v1047_v27 = vpop.f32.mrb[75].mxu1 }
 0x217   :  { %v1048_v29 = vadd.f32 %v3077_v17, %v1047_v27  ;;  %2339 = vmatprep.mubr.f32.mxu0 %v1196_v19 }
 0x218   :  { %2340 = vmatmul.mubr.f32.gmra.mrb[72].mxu0 %v1197_v24  ;;  %v1199_v32 = vmax.f32 %v1053_v25, 0.0 }
 0x219   :  { %v1198_v30 = vmax.f32 %v1048_v29, 0.0  ;;  %v2219_v31 = vpop.f32.mrb[76].mxu1  ;;  %v3146_v29 = vld [vmem:[%s3230_s6] ss:$0 sm:$0xff]  ;;  %s2490_s6 = smov [#allocation2]  }
 0x21a   :  { %v1063_v33 = vadd.f32 %v2219_v31, %v3077_v17  ;;  %v1057_v35 = vpop.f32.mrb[77].mxu1  ;;  %s1697_s13 = sshll.u32 %s2490_s6, 4  ;;  %s1698_s13 = int_to_ptr.vmem [resolvable:$true] %s1697_s13 }
 0x21b   :  { %v1058_v38 = vadd.f32 %v3077_v17, %v1057_v35  ;;  %2342 = vmatprep.mubr.f32.mxu0 %v1198_v30  ;;  %s2466_s14 = scalar_lea.vmem %s1698_s13, 8192  ;;  %p2471_p1 = scmp.lt.s32.totalorder %s1698_s13, %s1698_s13 }
 0x21c   :  { %2343 = vmatmul.mubr.f32.gmra.mrb[74].mxu0 %v1199_v32  ;;  %v1201_v45 = vmax.f32 %v1063_v33, 0.0  ;;  %p2467_p0 = scmp.ne.s32.totalorder %s1698_s13, %s2466_s14  ;;  %p2472_p2 = scmp.lt.s32.totalorder %s2466_s14, %s2466_s14 }
 0x21d   :  { %v1200_v40 = vmax.f32 %v1058_v38, 0.0  ;;  %v2222_v44 = vpop.f32.mrb[78].mxu1 }
 0x21e   :  { %v1073_v46 = vadd.f32 %v2222_v44, %v3077_v17  ;;  %v1067_v47 = vpop.f32.mrb[79].mxu1  ;;  %p2473_p3 = por %p2472_p2, %p2471_p1 }
 0x21f   :  { %v1068_v48 = vadd.f32 %v3077_v17, %v1067_v47  ;;  %2345 = vmatprep.mubr.f32.mxu0 %v1200_v40 }
 0x220   :  { %2346 = vmatmul.mubr.f32.gmra.mrb[76].mxu0 %v1201_v45  ;;  %v1203_v54 = vmax.f32 %v1073_v46, 0.0  ;;  %p2474_p4 = pnand %p2473_p3, %p2467_p0 }
 0x221   :  { %v1202_v49 = vmax.f32 %v1068_v48, 0.0  ;;  %v2225_v51 = vpop.f32.mrb[80].mxu1 }
 0x222   :  { %v1083_v56 = vadd.f32 %v2225_v51, %v3077_v17  ;;  %v1077_v57 = vpop.f32.mrb[81].mxu1 }
 0x223   :  { %v1078_v58 = vadd.f32 %v3077_v17, %v1077_v57  ;;  %2348 = vmatprep.mubr.f32.mxu0 %v1202_v49 }
 0x224   :  { %2349 = vmatmul.mubr.f32.gmra.mrb[78].mxu0 %v1203_v54  ;;  %v1205_v63 = vmax.f32 %v1083_v56, 0.0 }
 0x225   :  { %v1204_v60 = vmax.f32 %v1078_v58, 0.0  ;;  %v2228_v62 = vpop.f32.mrb[82].mxu1 }
 0x226   :  { %v1093_v0 = vadd.f32 %v2228_v62, %v3077_v17  ;;  %v1087_v4 = vpop.f32.mrb[83].mxu1 }
 0x227   :  { %v1088_v6 = vadd.f32 %v3077_v17, %v1087_v4  ;;  %2351 = vmatprep.mubr.f32.mxu0 %v1204_v60 }
 0x228   :  { %2352 = vmatmul.mubr.f32.gmra.mrb[80].mxu0 %v1205_v63  ;;  %v1207_v11 = vmax.f32 %v1093_v0, 0.0 }
 0x229   :  { %v1206_v7 = vmax.f32 %v1088_v6, 0.0  ;;  %v2231_v9 = vpop.f32.mrb[84].mxu1 }
 0x22a   :  { %v1103_v12 = vadd.f32 %v2231_v9, %v3077_v17  ;;  %v1097_v43 = vpop.f32.mrb[85].mxu1 }
 0x22b   :  { %v1098_v13 = vadd.f32 %v3077_v17, %v1097_v43  ;;  %2354 = vmatprep.mubr.f32.mxu0 %v1206_v7 }
 0x22c   :  { %2355 = vmatmul.mubr.f32.gmra.mrb[82].mxu0 %v1207_v11  ;;  %v1209_v36 = vmax.f32 %v1103_v12, 0.0 }
 0x22d   :  { %v1208_v15 = vmax.f32 %v1098_v13, 0.0  ;;  %v2234_v18 = vpop.f32.mrb[86].mxu1 }
 0x22e   :  { %v1113_v20 = vadd.f32 %v2234_v18, %v3077_v17  ;;  %v1107_v22 = vpop.f32.mrb[87].mxu1 }
 0x22f   :  { %v1108_v61 = vadd.f32 %v3077_v17, %v1107_v22  ;;  %2357 = vmatprep.mubr.f32.mxu0 %v1208_v15 }
 0x230   :  { %2358 = vmatmul.mubr.f32.gmra.mrb[84].mxu0 %v1209_v36  ;;  %v1211_v59 = vmax.f32 %v1113_v20, 0.0 }
 0x231   :  { %v1210_v42 = vmax.f32 %v1108_v61, 0.0  ;;  %v2237_v10 = vpop.f32.mrb[88].mxu1 }
 0x232   :  { %v1123_v23 = vadd.f32 %v2237_v10, %v3077_v17  ;;  %v1117_v8 = vpop.f32.mrb[89].mxu1 }
 0x233   :  { %v1118_v37 = vadd.f32 %v3077_v17, %v1117_v8  ;;  %2360 = vmatprep.mubr.f32.mxu0 %v1210_v42 }
 0x234   :  { %2361 = vmatmul.mubr.f32.gmra.mrb[86].mxu0 %v1211_v59  ;;  %v1213_v34 = vmax.f32 %v1123_v23, 0.0 }
 0x235   :  { %v1212_v21 = vmax.f32 %v1118_v37, 0.0  ;;  %v2240_v52 = vpop.f32.mrb[90].mxu1 }
 0x236   :  { %v1133_v3 = vadd.f32 %v2240_v52, %v3077_v17  ;;  %v1127_v50 = vpop.f32.mrb[91].mxu1 }
 0x237   :  { %v1128_v16 = vadd.f32 %v3077_v17, %v1127_v50  ;;  %2363 = vmatprep.mubr.f32.mxu0 %v1212_v21 }
 0x238   :  { %2364 = vmatmul.mubr.f32.gmra.mrb[88].mxu0 %v1213_v34  ;;  %v1215_v14 = vmax.f32 %v1133_v3, 0.0 }
 0x239   :  { %v1214_v1 = vmax.f32 %v1128_v16, 0.0  ;;  %v2243_v28 = vpop.f32.mrb[92].mxu1 }
 0x23a   :  { %v1143_v41 = vadd.f32 %v2243_v28, %v3077_v17  ;;  %v1137_v26 = vpop.f32.mrb[93].mxu1 }
 0x23b   :  { %v1138_v55 = vadd.f32 %v3077_v17, %v1137_v26  ;;  %2366 = vmatprep.mubr.f32.mxu0 %v1214_v1 }
 0x23c   :  { %2367 = vmatmul.mubr.f32.gmra.mrb[90].mxu0 %v1215_v14  ;;  %v1217_v53 = vmax.f32 %v1143_v41, 0.0 }
 0x23d   :  { %v1216_v39 = vmax.f32 %v1138_v55, 0.0  ;;  %v2246_v5 = vpop.f32.mrb[94].mxu1 }
 0x23e   :  { %v1153_v19 = vadd.f32 %v2246_v5, %v3077_v17  ;;  %v1147_v2 = vpop.f32.mrb[95].mxu1 }
 0x23f   :  { %v1148_v24 = vadd.f32 %v3077_v17, %v1147_v2  ;;  %2369 = vmatprep.mubr.f32.mxu0 %v1216_v39 }
 0x240   :  { %2370 = vmatmul.mubr.f32.gmra.mrb[92].mxu0 %v1217_v53  ;;  %v1219_v27 = vmax.f32 %v1153_v19, 0.0 }
 0x241   :  { %v1218_v25 = vmax.f32 %v1148_v24, 0.0 }
 0x243   :  { %2372 = vmatprep.mubr.f32.mxu0 %v1218_v25 }
 0x244   :  { %2373 = vmatmul.mubr.f32.gmra.mrb[94].mxu0 %v1219_v27 }
 0x29b   :  { %v2281_v30 = vpop.f32.mrb[32].mxu0 }
 0x29c   :  { %v1315_v31 = vadd.f32 %v2281_v30, %v3146_v29  ;;  %v1309_v32 = vpop.f32.mrb[33].mxu0 }
 0x29d   :  { %v1310_v33 = vadd.f32 %v3146_v29, %v1309_v32 }
 0x29e   :  { %1629 = vst [vmem:[#allocation2 + $0x8] sm:$0xff] %v1315_v31 }
 0x29f   :  { %1628 = vst [vmem:[#allocation2] sm:$0xff] %v1310_v33  ;;  %v2284_v17 = vpop.f32.mrb[34].mxu0 }
 0x2a0   :  { %v1325_v35 = vadd.f32 %v2284_v17, %v3146_v29  ;;  %v1319_v38 = vpop.f32.mrb[35].mxu0 }
 0x2a1   :  { %v1320_v40 = vadd.f32 %v3146_v29, %v1319_v38 }
 0x2a2   :  { %1631 = vst [vmem:[#allocation2 + $0x18] sm:$0xff] %v1325_v35 }
 0x2a3   :  { %1630 = vst [vmem:[#allocation2 + $0x10] sm:$0xff] %v1320_v40  ;;  %v2287_v44 = vpop.f32.mrb[36].mxu0 }
 0x2a4   :  { %v1335_v45 = vadd.f32 %v2287_v44, %v3146_v29  ;;  %v1329_v46 = vpop.f32.mrb[37].mxu0 }
 0x2a5   :  { %v1330_v47 = vadd.f32 %v3146_v29, %v1329_v46 }
 0x2a6   :  { %1633 = vst [vmem:[#allocation2 + $0x28] sm:$0xff] %v1335_v45 }
 0x2a7   :  { %1632 = vst [vmem:[#allocation2 + $0x20] sm:$0xff] %v1330_v47  ;;  %v2290_v48 = vpop.f32.mrb[38].mxu0 }
 0x2a8   :  { %v1345_v49 = vadd.f32 %v2290_v48, %v3146_v29  ;;  %v1339_v51 = vpop.f32.mrb[39].mxu0 }
 0x2a9   :  { %v1340_v54 = vadd.f32 %v3146_v29, %v1339_v51 }
 0x2aa   :  { %1635 = vst [vmem:[#allocation2 + $0x38] sm:$0xff] %v1345_v49 }
 0x2ab   :  { %1634 = vst [vmem:[#allocation2 + $0x30] sm:$0xff] %v1340_v54  ;;  %v2293_v56 = vpop.f32.mrb[40].mxu0 }
 0x2ac   :  { %v1355_v57 = vadd.f32 %v2293_v56, %v3146_v29  ;;  %v1349_v58 = vpop.f32.mrb[41].mxu0 }
 0x2ad   :  { %v1350_v60 = vadd.f32 %v3146_v29, %v1349_v58 }
 0x2ae   :  { %1637 = vst [vmem:[#allocation2 + $0x48] sm:$0xff] %v1355_v57 }
 0x2af   :  { %1636 = vst [vmem:[#allocation2 + $0x40] sm:$0xff] %v1350_v60  ;;  %v2296_v62 = vpop.f32.mrb[42].mxu0 }
 0x2b0   :  { %v1365_v63 = vadd.f32 %v2296_v62, %v3146_v29  ;;  %v1359_v0 = vpop.f32.mrb[43].mxu0 }
 0x2b1   :  { %v1360_v4 = vadd.f32 %v3146_v29, %v1359_v0 }
 0x2b2   :  { %1639 = vst [vmem:[#allocation2 + $0x58] sm:$0xff] %v1365_v63 }
 0x2b3   :  { %1638 = vst [vmem:[#allocation2 + $0x50] sm:$0xff] %v1360_v4  ;;  %v2299_v6 = vpop.f32.mrb[44].mxu0 }
 0x2b4   :  { %v1375_v7 = vadd.f32 %v2299_v6, %v3146_v29  ;;  %v1369_v9 = vpop.f32.mrb[45].mxu0 }
 0x2b5   :  { %v1370_v11 = vadd.f32 %v3146_v29, %v1369_v9 }
 0x2b6   :  { %1641 = vst [vmem:[#allocation2 + $0x68] sm:$0xff] %v1375_v7 }
 0x2b7   :  { %1640 = vst [vmem:[#allocation2 + $0x60] sm:$0xff] %v1370_v11  ;;  %v2302_v12 = vpop.f32.mrb[46].mxu0 }
 0x2b8   :  { %v1385_v43 = vadd.f32 %v2302_v12, %v3146_v29  ;;  %v1379_v13 = vpop.f32.mrb[47].mxu0 }
 0x2b9   :  { %v1380_v15 = vadd.f32 %v3146_v29, %v1379_v13 }
 0x2ba   :  { %1643 = vst [vmem:[#allocation2 + $0x78] sm:$0xff] %v1385_v43 }
 0x2bb   :  { %1642 = vst [vmem:[#allocation2 + $0x70] sm:$0xff] %v1380_v15  ;;  %v2305_v18 = vpop.f32.mrb[48].mxu0 }
 0x2bc   :  { %v1395_v36 = vadd.f32 %v2305_v18, %v3146_v29  ;;  %v1389_v20 = vpop.f32.mrb[49].mxu0 }
 0x2bd   :  { %v1390_v22 = vadd.f32 %v3146_v29, %v1389_v20 }
 0x2be   :  { %1645 = vst [vmem:[#allocation2 + $0x88] sm:$0xff] %v1395_v36 }
 0x2bf   :  { %1644 = vst [vmem:[#allocation2 + $0x80] sm:$0xff] %v1390_v22  ;;  %v2308_v61 = vpop.f32.mrb[50].mxu0 }
 0x2c0   :  { %v1405_v42 = vadd.f32 %v2308_v61, %v3146_v29  ;;  %v1399_v10 = vpop.f32.mrb[51].mxu0 }
 0x2c1   :  { %v1400_v59 = vadd.f32 %v3146_v29, %v1399_v10 }
 0x2c2   :  { %1647 = vst [vmem:[#allocation2 + $0x98] sm:$0xff] %v1405_v42 }
 0x2c3   :  { %1646 = vst [vmem:[#allocation2 + $0x90] sm:$0xff] %v1400_v59  ;;  %v2311_v23 = vpop.f32.mrb[52].mxu0 }
 0x2c4   :  { %v1415_v8 = vadd.f32 %v2311_v23, %v3146_v29  ;;  %v1409_v37 = vpop.f32.mrb[53].mxu0 }
 0x2c5   :  { %v1410_v21 = vadd.f32 %v3146_v29, %v1409_v37 }
 0x2c6   :  { %1649 = vst [vmem:[#allocation2 + $0xa8] sm:$0xff] %v1415_v8 }
 0x2c7   :  { %1648 = vst [vmem:[#allocation2 + $0xa0] sm:$0xff] %v1410_v21  ;;  %v2314_v52 = vpop.f32.mrb[54].mxu0 }
 0x2c8   :  { %v1425_v34 = vadd.f32 %v2314_v52, %v3146_v29  ;;  %v1419_v3 = vpop.f32.mrb[55].mxu0 }
 0x2c9   :  { %v1420_v50 = vadd.f32 %v3146_v29, %v1419_v3 }
 0x2ca   :  { %1651 = vst [vmem:[#allocation2 + $0xb8] sm:$0xff] %v1425_v34 }
 0x2cb   :  { %1650 = vst [vmem:[#allocation2 + $0xb0] sm:$0xff] %v1420_v50  ;;  %v2317_v16 = vpop.f32.mrb[56].mxu0 }
 0x2cc   :  { %v1435_v1 = vadd.f32 %v2317_v16, %v3146_v29  ;;  %v1429_v28 = vpop.f32.mrb[57].mxu0 }
 0x2cd   :  { %v1430_v14 = vadd.f32 %v3146_v29, %v1429_v28 }
 0x2ce   :  { %1653 = vst [vmem:[#allocation2 + $0xc8] sm:$0xff] %v1435_v1 }
 0x2cf   :  { %1652 = vst [vmem:[#allocation2 + $0xc0] sm:$0xff] %v1430_v14  ;;  %v2320_v41 = vpop.f32.mrb[58].mxu0 }
 0x2d0   :  { %v1445_v26 = vadd.f32 %v2320_v41, %v3146_v29  ;;  %v1439_v55 = vpop.f32.mrb[59].mxu0 }
 0x2d1   :  { %v1440_v39 = vadd.f32 %v3146_v29, %v1439_v55 }
 0x2d2   :  { %1655 = vst [vmem:[#allocation2 + $0xd8] sm:$0xff] %v1445_v26 }
 0x2d3   :  { %1654 = vst [vmem:[#allocation2 + $0xd0] sm:$0xff] %v1440_v39  ;;  %v2323_v5 = vpop.f32.mrb[60].mxu0 }
 0x2d4   :  { %v1455_v53 = vadd.f32 %v2323_v5, %v3146_v29  ;;  %v1449_v19 = vpop.f32.mrb[61].mxu0 }
 0x2d5   :  { %v1450_v2 = vadd.f32 %v3146_v29, %v1449_v19 }
 0x2d6   :  { %1657 = vst [vmem:[#allocation2 + $0xe8] sm:$0xff] %v1455_v53 }
 0x2d7   :  { %1656 = vst [vmem:[#allocation2 + $0xe0] sm:$0xff] %v1450_v2  ;;  %v2326_v24 = vpop.f32.mrb[62].mxu0 }
 0x2d8   :  { %v1465_v25 = vadd.f32 %v2326_v24, %v3146_v29  ;;  %v1459_v27 = vpop.f32.mrb[63].mxu0 }
 0x2d9   :  { %v1460_v30 = vadd.f32 %v3146_v29, %v1459_v27 }
 0x2da   :  { %1659 = vst [vmem:[#allocation2 + $0xf8] sm:$0xff] %v1465_v25 }
 0x2db   :  { %1658 = vst [vmem:[#allocation2 + $0xf0] sm:$0xff] %v1460_v30  ;;  %v2329_v31 = vpop.f32.mrb[64].mxu0 }
 0x2dc   :  { %v1475_v32 = vadd.f32 %v2329_v31, %v3146_v29  ;;  %v1469_v33 = vpop.f32.mrb[65].mxu0 }
 0x2dd   :  { %v1470_v17 = vadd.f32 %v3146_v29, %v1469_v33 }
 0x2de   :  { %1661 = vst [vmem:[#allocation2 + $0x108] sm:$0xff] %v1475_v32 }
 0x2df   :  { %1660 = vst [vmem:[#allocation2 + $0x100] sm:$0xff] %v1470_v17  ;;  %v2332_v35 = vpop.f32.mrb[66].mxu0 }
 0x2e0   :  { %v1485_v38 = vadd.f32 %v2332_v35, %v3146_v29  ;;  %v1479_v40 = vpop.f32.mrb[67].mxu0 }
 0x2e1   :  { %v1480_v44 = vadd.f32 %v3146_v29, %v1479_v40 }
 0x2e2   :  { %1663 = vst [vmem:[#allocation2 + $0x118] sm:$0xff] %v1485_v38 }
 0x2e3   :  { %1662 = vst [vmem:[#allocation2 + $0x110] sm:$0xff] %v1480_v44  ;;  %v2335_v45 = vpop.f32.mrb[68].mxu0 }
 0x2e4   :  { %v1495_v46 = vadd.f32 %v2335_v45, %v3146_v29  ;;  %v1489_v47 = vpop.f32.mrb[69].mxu0 }
 0x2e5   :  { %v1490_v48 = vadd.f32 %v3146_v29, %v1489_v47 }
 0x2e6   :  { %1665 = vst [vmem:[#allocation2 + $0x128] sm:$0xff] %v1495_v46 }
 0x2e7   :  { %1664 = vst [vmem:[#allocation2 + $0x120] sm:$0xff] %v1490_v48  ;;  %v2338_v49 = vpop.f32.mrb[70].mxu0 }
 0x2e8   :  { %v1505_v51 = vadd.f32 %v2338_v49, %v3146_v29  ;;  %v1499_v54 = vpop.f32.mrb[71].mxu0 }
 0x2e9   :  { %v1500_v56 = vadd.f32 %v3146_v29, %v1499_v54 }
 0x2ea   :  { %1667 = vst [vmem:[#allocation2 + $0x138] sm:$0xff] %v1505_v51 }
 0x2eb   :  { %1666 = vst [vmem:[#allocation2 + $0x130] sm:$0xff] %v1500_v56  ;;  %v2341_v57 = vpop.f32.mrb[72].mxu0 }
 0x2ec   :  { %v1515_v58 = vadd.f32 %v2341_v57, %v3146_v29  ;;  %v1509_v60 = vpop.f32.mrb[73].mxu0 }
 0x2ed   :  { %v1510_v62 = vadd.f32 %v3146_v29, %v1509_v60 }
 0x2ee   :  { %1669 = vst [vmem:[#allocation2 + $0x148] sm:$0xff] %v1515_v58 }
 0x2ef   :  { %1668 = vst [vmem:[#allocation2 + $0x140] sm:$0xff] %v1510_v62  ;;  %v2344_v63 = vpop.f32.mrb[74].mxu0 }
 0x2f0   :  { %v1525_v0 = vadd.f32 %v2344_v63, %v3146_v29  ;;  %v1519_v4 = vpop.f32.mrb[75].mxu0 }
 0x2f1   :  { %v1520_v6 = vadd.f32 %v3146_v29, %v1519_v4 }
 0x2f2   :  { %1671 = vst [vmem:[#allocation2 + $0x158] sm:$0xff] %v1525_v0 }
 0x2f3   :  { %1670 = vst [vmem:[#allocation2 + $0x150] sm:$0xff] %v1520_v6  ;;  %v2347_v7 = vpop.f32.mrb[76].mxu0 }
 0x2f4   :  { %v1535_v9 = vadd.f32 %v2347_v7, %v3146_v29  ;;  %v1529_v11 = vpop.f32.mrb[77].mxu0 }
 0x2f5   :  { %v1530_v12 = vadd.f32 %v3146_v29, %v1529_v11 }
 0x2f6   :  { %1673 = vst [vmem:[#allocation2 + $0x168] sm:$0xff] %v1535_v9 }
 0x2f7   :  { %1672 = vst [vmem:[#allocation2 + $0x160] sm:$0xff] %v1530_v12  ;;  %v2350_v43 = vpop.f32.mrb[78].mxu0 }
 0x2f8   :  { %v1545_v13 = vadd.f32 %v2350_v43, %v3146_v29  ;;  %v1539_v15 = vpop.f32.mrb[79].mxu0 }
 0x2f9   :  { %v1540_v18 = vadd.f32 %v3146_v29, %v1539_v15 }
 0x2fa   :  { %1675 = vst [vmem:[#allocation2 + $0x178] sm:$0xff] %v1545_v13 }
 0x2fb   :  { %1674 = vst [vmem:[#allocation2 + $0x170] sm:$0xff] %v1540_v18  ;;  %v2353_v36 = vpop.f32.mrb[80].mxu0 }
 0x2fc   :  { %v1555_v20 = vadd.f32 %v2353_v36, %v3146_v29  ;;  %v1549_v22 = vpop.f32.mrb[81].mxu0 }
 0x2fd   :  { %v1550_v61 = vadd.f32 %v3146_v29, %v1549_v22 }
 0x2fe   :  { %1677 = vst [vmem:[#allocation2 + $0x188] sm:$0xff] %v1555_v20 }
 0x2ff   :  { %1676 = vst [vmem:[#allocation2 + $0x180] sm:$0xff] %v1550_v61  ;;  %v2356_v42 = vpop.f32.mrb[82].mxu0 }
 0x300   :  { %v1565_v10 = vadd.f32 %v2356_v42, %v3146_v29  ;;  %v1559_v59 = vpop.f32.mrb[83].mxu0 }
 0x301   :  { %v1560_v23 = vadd.f32 %v3146_v29, %v1559_v59 }
 0x302   :  { %1679 = vst [vmem:[#allocation2 + $0x198] sm:$0xff] %v1565_v10 }
 0x303   :  { %1678 = vst [vmem:[#allocation2 + $0x190] sm:$0xff] %v1560_v23  ;;  %v2359_v8 = vpop.f32.mrb[84].mxu0 }
 0x304   :  { %v1575_v37 = vadd.f32 %v2359_v8, %v3146_v29  ;;  %v1569_v21 = vpop.f32.mrb[85].mxu0 }
 0x305   :  { %v1570_v52 = vadd.f32 %v3146_v29, %v1569_v21 }
 0x306   :  { %1681 = vst [vmem:[#allocation2 + $0x1a8] sm:$0xff] %v1575_v37 }
 0x307   :  { %1680 = vst [vmem:[#allocation2 + $0x1a0] sm:$0xff] %v1570_v52  ;;  %v2362_v34 = vpop.f32.mrb[86].mxu0 }
 0x308   :  { %v1585_v3 = vadd.f32 %v2362_v34, %v3146_v29  ;;  %v1579_v50 = vpop.f32.mrb[87].mxu0 }
 0x309   :  { %v1580_v16 = vadd.f32 %v3146_v29, %v1579_v50 }
 0x30a   :  { %1683 = vst [vmem:[#allocation2 + $0x1b8] sm:$0xff] %v1585_v3 }
 0x30b   :  { %1682 = vst [vmem:[#allocation2 + $0x1b0] sm:$0xff] %v1580_v16  ;;  %v2365_v1 = vpop.f32.mrb[88].mxu0 }
 0x30c   :  { %v1595_v28 = vadd.f32 %v2365_v1, %v3146_v29  ;;  %v1589_v14 = vpop.f32.mrb[89].mxu0 }
 0x30d   :  { %v1590_v41 = vadd.f32 %v3146_v29, %v1589_v14 }
 0x30e   :  { %1685 = vst [vmem:[#allocation2 + $0x1c8] sm:$0xff] %v1595_v28 }
 0x30f   :  { %1684 = vst [vmem:[#allocation2 + $0x1c0] sm:$0xff] %v1590_v41  ;;  %v2368_v26 = vpop.f32.mrb[90].mxu0 }
 0x310   :  { %v1605_v55 = vadd.f32 %v2368_v26, %v3146_v29  ;;  %v1599_v39 = vpop.f32.mrb[91].mxu0 }
 0x311   :  { %v1600_v5 = vadd.f32 %v3146_v29, %v1599_v39 }
 0x312   :  { %1687 = vst [vmem:[#allocation2 + $0x1d8] sm:$0xff] %v1605_v55 }
 0x313   :  { %1686 = vst [vmem:[#allocation2 + $0x1d0] sm:$0xff] %v1600_v5  ;;  %v2371_v53 = vpop.f32.mrb[92].mxu0 }
 0x314   :  { %v1615_v19 = vadd.f32 %v2371_v53, %v3146_v29  ;;  %v1609_v2 = vpop.f32.mrb[93].mxu0 }
 0x315   :  { %v1610_v24 = vadd.f32 %v3146_v29, %v1609_v2 }
 0x316   :  { %1689 = vst [vmem:[#allocation2 + $0x1e8] sm:$0xff] %v1615_v19 }
 0x317   :  { %1688 = vst [vmem:[#allocation2 + $0x1e0] sm:$0xff] %v1610_v24  ;;  %v2374_v25 = vpop.f32.mrb[94].mxu0 }
 0x318   :  { %v1625_v27 = vadd.f32 %v2374_v25, %v3146_v29  ;;  %v1619_v30 = vpop.f32.mrb[95].mxu0 }
 0x319   :  { %v1620_v31 = vadd.f32 %v3146_v29, %v1619_v30 }
 0x31a   :  { %1691 = vst [vmem:[#allocation2 + $0x1f8] sm:$0xff] %v1625_v27 }
 0x31b   :  { %1690 = vst [vmem:[#allocation2 + $0x1f0] sm:$0xff] %v1620_v31 }
 0x31c   :  { %2477 = shalt.err (!%p2474_p4)
}
 0x31d   :  { %s2478_s17 = scalar_lea.hbm %s3231_s7, 8192 }
 0x31e   :  { %p2479_p5 = scmp.ne.s32.totalorder %s3231_s7, %s2478_s17  ;;  %p2482_p6 = scmp.lt.u32.totalorder %s2478_s17, %s3231_s7 }
 0x320   :  { %p2484_p7 = pnand %p2482_p6, %p2479_p5 }
 0x322   :  { %2487 = shalt.err (!%p2484_p7)
}
 0x323   :  { %s2491_s22 = smov 128   ;;  %s2492_s1 = smov 8  }
 0x324   :  { %1703 = dma.vmem_to_hbm [thread:$0]  %s1698_s13, 8192, %s3231_s7, [#allocation3], %s2491_s22, %s2491_s22, %s2492_s1  }
 0x325   :  { %2488 = dma.done.wait [#allocation3], 8192  }
 0x326   :  { %2489 = vsyncadd [#allocation3], 4294959104 }
 0x327   :  { %1707 = vsyncpa [#allocation3], 1 }

</bundles_post_ra>
